<compile_context>
chip_gen: v7x
topology: tpu7x:2x2x1
jax: 0.10.0
libtpu: 0.0.40
codegen_flags: <defaults>
</compile_context>

<pallas_src>
import functools

import jax
import jax.numpy as jnp
from jax.experimental import pallas as pl
from jax.experimental.pallas import tpu as pltpu

LN_EPS = 1e-5


def _fused_add_ln(hs_ref, res_ref, gamma_ref, beta_ref, resid_out_ref, normed_ref):
    """Add + LayerNorm (f32 math), result cached as bf16 in `normed_ref`."""
    hs = hs_ref[...].astype(jnp.float32)                      # (TM, D)
    if res_ref is not None:
        residual = hs + res_ref[...].astype(jnp.float32)      # Add
    else:
        residual = hs
    resid_out_ref[...] = residual.astype(resid_out_ref.dtype)  # residual_in_fp32

    # LayerNorm over last dim (biased variance, like nn.LayerNorm)
    mean = jnp.mean(residual, axis=-1, keepdims=True)
    centered = residual - mean
    var = jnp.mean(centered * centered, axis=-1, keepdims=True)
    normed = centered * jax.lax.rsqrt(var + LN_EPS)
    normed = normed * gamma_ref[...] + beta_ref[...]
    normed_ref[...] = normed.astype(normed_ref.dtype)          # bf16 for the MXU


def _mixer_tile(w_ref, b_ref, out_ref, normed_ref):
    """Mixer stand-in: Linear(D, D), N-tiled. bf16 inputs, f32 accumulation."""
    mixed = jnp.dot(normed_ref[...], w_ref[...],
                    preferred_element_type=jnp.float32)        # (TM, TN)
    mixed = mixed + b_ref[...].astype(jnp.float32)
    out_ref[...] = mixed.astype(out_ref.dtype)


def _block_kernel(hs_ref, res_ref, gamma_ref, beta_ref, w_ref, b_ref,
                  out_ref, resid_out_ref, normed_ref):
    @pl.when(pl.program_id(1) == 0)
    def _():
        _fused_add_ln(hs_ref, res_ref, gamma_ref, beta_ref, resid_out_ref, normed_ref)

    _mixer_tile(w_ref, b_ref, out_ref, normed_ref)


def _block_kernel_nores(hs_ref, gamma_ref, beta_ref, w_ref, b_ref,
                        out_ref, resid_out_ref, normed_ref):
    @pl.when(pl.program_id(1) == 0)
    def _():
        _fused_add_ln(hs_ref, None, gamma_ref, beta_ref, resid_out_ref, normed_ref)

    _mixer_tile(w_ref, b_ref, out_ref, normed_ref)


@functools.partial(jax.jit, static_argnames=("row_tile", "tile_n"))
def block_forward(hidden_states, residual, gamma, beta, w_mixer_bf16, b_mixer,
                  row_tile=256, tile_n=None):
    """hidden_states: (T, B, D); residual: (T, B, D) or None.

    Returns (mixer_out (T,B,D) in input dtype, residual_out (T,B,D) float32).
    """
    T, B, D = hidden_states.shape
    out_dtype = hidden_states.dtype
    L = T * B

    if tile_n is None:
        tile_n = D if D <= 512 else 512
    assert D % tile_n == 0, "D must be divisible by tile_n"
    assert tile_n % 128 == 0 or tile_n == D, "output tiles must be lane-dense"
    assert D % 128 == 0, "D must be a multiple of 128 (pad in the caller otherwise)"
    assert row_tile % 8 == 0

    # Pad the flattened row count to a multiple of row_tile (zero rows are benign).
    Lp = pl.cdiv(L, row_tile) * row_tile
    hs2 = hidden_states.reshape(L, D)
    if Lp != L:
        hs2 = jnp.pad(hs2, ((0, Lp - L), (0, 0)))

    has_res = residual is not None
    if has_res:
        res2 = residual.reshape(L, D)
        if Lp != L:
            res2 = jnp.pad(res2, ((0, Lp - L), (0, 0)))

    gamma2 = gamma.reshape(1, D).astype(jnp.float32)
    beta2 = beta.reshape(1, D).astype(jnp.float32)
    b2 = b_mixer.reshape(1, D).astype(jnp.float32)
    w_bf16 = w_mixer_bf16.astype(jnp.bfloat16)

    grid = (Lp // row_tile, D // tile_n)

    row_full_spec = pl.BlockSpec((row_tile, D), lambda i, j: (i, 0))     # hs / res
    gb_spec = pl.BlockSpec((1, D), lambda i, j: (0, 0))                  # gamma/beta
    w_spec = pl.BlockSpec((D, tile_n), lambda i, j: (0, j))              # weight N-tile
    bias_spec = pl.BlockSpec((1, tile_n), lambda i, j: (0, j))           # bias N-tile
    out_spec = pl.BlockSpec((row_tile, tile_n), lambda i, j: (i, j))     # mixer out
    resid_spec = pl.BlockSpec((row_tile, D), lambda i, j: (i, 0))        # residual out

    if has_res:
        kernel = _block_kernel
        in_specs = [row_full_spec, row_full_spec, gb_spec, gb_spec, w_spec, bias_spec]
        inputs = (hs2, res2, gamma2, beta2, w_bf16, b2)
    else:
        kernel = _block_kernel_nores
        in_specs = [row_full_spec, gb_spec, gb_spec, w_spec, bias_spec]
        inputs = (hs2, gamma2, beta2, w_bf16, b2)

    out, resid_out = pl.pallas_call(
        kernel,
        out_shape=(
            jax.ShapeDtypeStruct((Lp, D), out_dtype),
            jax.ShapeDtypeStruct((Lp, D), jnp.float32),   # residual_in_fp32=True
        ),
        grid_spec=pltpu.PrefetchScalarGridSpec(
            num_scalar_prefetch=0,
            grid=grid,
            in_specs=in_specs,
            out_specs=[out_spec, resid_spec],
            scratch_shapes=[pltpu.VMEM((row_tile, D), jnp.bfloat16)],  # cached LN result
        ),
        compiler_params=pltpu.CompilerParams(
            dimension_semantics=("parallel", "arbitrary"),
            vmem_limit_bytes=48 * 1024 * 1024,
        ),
    )(*inputs)

    out = out[:L].reshape(T, B, D)
    resid_out = resid_out[:L].reshape(T, B, D)
    return out, resid_out


def _reference(hidden_states, residual, gamma, beta, w_bf16, b_mixer):
    hs = hidden_states.astype(jnp.float32)
    residual_out = hs + residual.astype(jnp.float32) if residual is not None else hs
    x = residual_out
    mean = jnp.mean(x, axis=-1, keepdims=True)
    var = jnp.mean((x - mean) ** 2, axis=-1, keepdims=True)
    normed = (x - mean) * jax.lax.rsqrt(var + LN_EPS) * gamma + beta
    mixed = jnp.dot(normed.astype(jnp.bfloat16), w_bf16.astype(jnp.bfloat16),
                    preferred_element_type=jnp.float32) + b_mixer
    return mixed.astype(hidden_states.dtype), residual_out


if __name__ == "__main__":
    # Small shapes consistent with the module, lane-dense D: (T=32, B=16, D=128).
    T, B, D = 32, 16, 128
    key = jax.random.PRNGKey(0)
    k1, k2, k3, k4 = jax.random.split(key, 4)

    hidden_states = jax.random.normal(k1, (T, B, D), dtype=jnp.float32)
    residual = jax.random.normal(k2, (T, B, D), dtype=jnp.float32)

    # Deterministic parameter init (LayerNorm: weight=1, bias=0; mixer linear).
    gamma = jnp.ones((D,), dtype=jnp.float32)
    beta = jnp.zeros((D,), dtype=jnp.float32)
    w_mixer = (jax.random.normal(k3, (D, D), dtype=jnp.float32)
               * (1.0 / jnp.sqrt(D))).astype(jnp.bfloat16)
    b_mixer = jax.random.normal(k4, (D,), dtype=jnp.float32) * 0.01

    # Case 1: residual provided.
    out, resid = block_forward(hidden_states, residual, gamma, beta, w_mixer, b_mixer)
    jax.block_until_ready((out, resid))
    ref_out, ref_resid = _reference(hidden_states, residual, gamma, beta, w_mixer, b_mixer)
    assert out.shape == (T, B, D) and resid.shape == (T, B, D)
    assert resid.dtype == jnp.float32
    assert jnp.allclose(out, ref_out, atol=1e-2, rtol=1e-2)
    assert jnp.allclose(resid, ref_resid, atol=1e-5, rtol=1e-5)

    # Case 2: first block (residual=None).
    out0, resid0 = block_forward(hidden_states, None, gamma, beta, w_mixer, b_mixer)
    jax.block_until_ready((out0, resid0))
    ref_out0, ref_resid0 = _reference(hidden_states, None, gamma, beta, w_mixer, b_mixer)
    assert jnp.allclose(out0, ref_out0, atol=1e-2, rtol=1e-2)
    assert jnp.allclose(resid0, ref_resid0, atol=1e-5, rtol=1e-5)

    print("KERNEL_OK")
</pallas_src>

<mosaic_0001>
module attributes {stable_mosaic.version = 11 : i64} {
  func.func @_block_kernel(%arg0: i32, %arg1: i32, %arg2: memref<256x128xf32, #tpu.memory_space<vmem>>, %arg3: memref<256x128xf32, #tpu.memory_space<vmem>>, %arg4: memref<1x128xf32, #tpu.memory_space<vmem>>, %arg5: memref<1x128xf32, #tpu.memory_space<vmem>>, %arg6: memref<128x128xbf16, #tpu.memory_space<vmem>>, %arg7: memref<1x128xf32, #tpu.memory_space<vmem>>, %arg8: memref<256x128xf32, #tpu.memory_space<vmem>>, %arg9: memref<256x128xf32, #tpu.memory_space<vmem>>, %arg10: memref<256x128xbf16, #tpu.memory_space<vmem>>) attributes {dimension_semantics = [#tpu.dimension_semantics<parallel>, #tpu.dimension_semantics<arbitrary>], iteration_bounds = array<i64: 2, 1>, scalar_prefetch = 0 : i64, scratch_operands = 1 : i64, tpu.core_type = #tpu.core_type<tc>, window_params = [{transform_indices = @transform_0, window_bounds = array<i64: 256, 128>}, {transform_indices = @transform_1, window_bounds = array<i64: 256, 128>}, {pipeline_mode = #tpu.pipeline_mode<synchronous>, transform_indices = @transform_2, window_bounds = array<i64: 1, 128>}, {pipeline_mode = #tpu.pipeline_mode<synchronous>, transform_indices = @transform_3, window_bounds = array<i64: 1, 128>}, {transform_indices = @transform_4, window_bounds = array<i64: 128, 128>}, {transform_indices = @transform_5, window_bounds = array<i64: 1, 128>}, {transform_indices = @transform_6, window_bounds = array<i64: 256, 128>}, {transform_indices = @transform_7, window_bounds = array<i64: 256, 128>}]} {
    %c0_i32 = arith.constant 0 : i32
    %0 = arith.cmpi eq, %arg1, %c0_i32 : i32
    %1 = arith.extui %0 : i1 to i32
    %c0_i32_0 = arith.constant 0 : i32
    %2 = arith.cmpi ne, %1, %c0_i32_0 : i32
    scf.if %2 {
      %c0_8 = arith.constant 0 : index
      %c0_9 = arith.constant 0 : index
      %10 = vector.load %arg2[%c0_8, %c0_9] : memref<256x128xf32, #tpu.memory_space<vmem>>, vector<256x128xf32>
      %c0_10 = arith.constant 0 : index
      %c0_11 = arith.constant 0 : index
      %11 = vector.load %arg3[%c0_10, %c0_11] : memref<256x128xf32, #tpu.memory_space<vmem>>, vector<256x128xf32>
      %12 = arith.addf %10, %11 : vector<256x128xf32>
      %c0_12 = arith.constant 0 : index
      %c0_13 = arith.constant 0 : index
      %13 = vector.load %arg9[%c0_12, %c0_13] : memref<256x128xf32, #tpu.memory_space<vmem>>, vector<256x128xf32>
      tpu.vector_store %arg9[%c0_12, %c0_13], %12 {strides = array<i32>} : memref<256x128xf32, #tpu.memory_space<vmem>>, vector<256x128xf32>,
      %cst_14 = arith.constant dense<0.000000e+00> : vector<256xf32>
      %14 = vector.multi_reduction <add>, %12, %cst_14 [1] : vector<256x128xf32> to vector<256xf32>
      %15 = vector.shape_cast %14 : vector<256xf32> to vector<256x1xf32>
      %cst_15 = arith.constant 1.280000e+02 : f32
      %16 = vector.broadcast %cst_15 : f32 to vector<256x1xf32>
      %17 = arith.divf %15, %16 : vector<256x1xf32>
      %18 = vector.broadcast %17 : vector<256x1xf32> to vector<256x128xf32>
      %19 = arith.subf %12, %18 : vector<256x128xf32>
      %20 = arith.mulf %19, %19 : vector<256x128xf32>
      %cst_16 = arith.constant dense<0.000000e+00> : vector<256xf32>
      %21 = vector.multi_reduction <add>, %20, %cst_16 [1] : vector<256x128xf32> to vector<256xf32>
      %22 = vector.shape_cast %21 : vector<256xf32> to vector<256x1xf32>
      %cst_17 = arith.constant 1.280000e+02 : f32
      %23 = vector.broadcast %cst_17 : f32 to vector<256x1xf32>
      %24 = arith.divf %22, %23 : vector<256x1xf32>
      %cst_18 = arith.constant 9.99999974E-6 : f32
      %25 = vector.broadcast %cst_18 : f32 to vector<256x1xf32>
      %26 = arith.addf %24, %25 : vector<256x1xf32>
      %27 = math.rsqrt %26 : vector<256x1xf32>
      %28 = vector.broadcast %27 : vector<256x1xf32> to vector<256x128xf32>
      %29 = arith.mulf %19, %28 : vector<256x128xf32>
      %c0_19 = arith.constant 0 : index
      %c0_20 = arith.constant 0 : index
      %30 = vector.load %arg4[%c0_19, %c0_20] : memref<1x128xf32, #tpu.memory_space<vmem>>, vector<1x128xf32>
      %31 = vector.broadcast %30 : vector<1x128xf32> to vector<256x128xf32>
      %32 = arith.mulf %29, %31 : vector<256x128xf32>
      %c0_21 = arith.constant 0 : index
      %c0_22 = arith.constant 0 : index
      %33 = vector.load %arg5[%c0_21, %c0_22] : memref<1x128xf32, #tpu.memory_space<vmem>>, vector<1x128xf32>
      %34 = vector.broadcast %33 : vector<1x128xf32> to vector<256x128xf32>
      %35 = arith.addf %32, %34 : vector<256x128xf32>
      %36 = arith.truncf %35 : vector<256x128xf32> to vector<256x128xbf16>
      %c0_23 = arith.constant 0 : index
      %c0_24 = arith.constant 0 : index
      %37 = vector.load %arg10[%c0_23, %c0_24] : memref<256x128xbf16, #tpu.memory_space<vmem>>, vector<256x128xbf16>
      tpu.vector_store %arg10[%c0_23, %c0_24], %36 {strides = array<i32>} : memref<256x128xbf16, #tpu.memory_space<vmem>>, vector<256x128xbf16>,
    } else {
    }
    %c0 = arith.constant 0 : index
    %c0_1 = arith.constant 0 : index
    %3 = vector.load %arg10[%c0, %c0_1] : memref<256x128xbf16, #tpu.memory_space<vmem>>, vector<256x128xbf16>
    %c0_2 = arith.constant 0 : index
    %c0_3 = arith.constant 0 : index
    %4 = vector.load %arg6[%c0_2, %c0_3] : memref<128x128xbf16, #tpu.memory_space<vmem>>, vector<128x128xbf16>
    %cst = arith.constant dense<0.000000e+00> : vector<256x128xf32>
    %5 = tpu.matmul %3, %4, %cst {dimension_numbers = #tpu.dot_dimension_numbers<[1], [0], [0], [1], [0, 0, 1, 1], [], []>} : vector<256x128xbf16>, vector<128x128xbf16>, vector<256x128xf32> -> vector<256x128xf32>
    %c0_4 = arith.constant 0 : index
    %c0_5 = arith.constant 0 : index
    %6 = vector.load %arg7[%c0_4, %c0_5] : memref<1x128xf32, #tpu.memory_space<vmem>>, vector<1x128xf32>
    %7 = vector.broadcast %6 : vector<1x128xf32> to vector<256x128xf32>
    %8 = arith.addf %5, %7 : vector<256x128xf32>
    %c0_6 = arith.constant 0 : index
    %c0_7 = arith.constant 0 : index
    %9 = vector.load %arg8[%c0_6, %c0_7] : memref<256x128xf32, #tpu.memory_space<vmem>>, vector<256x128xf32>
    tpu.vector_store %arg8[%c0_6, %c0_7], %8 {strides = array<i32>} : memref<256x128xf32, #tpu.memory_space<vmem>>, vector<256x128xf32>,
    return
  }
  func.func @transform_0(%arg0: i32, %arg1: i32) -> (i32, i32) {
    %c0_i32 = arith.constant 0 : i32
    %c0_i32_0 = arith.constant 0 : i32
    return %arg0, %c0_i32 : i32, i32
  }
  func.func @transform_1(%arg0: i32, %arg1: i32) -> (i32, i32) {
    %c0_i32 = arith.constant 0 : i32
    %c0_i32_0 = arith.constant 0 : i32
    return %arg0, %c0_i32 : i32, i32
  }
  func.func @transform_2(%arg0: i32, %arg1: i32) -> (i32, i32) {
    %c0_i32 = arith.constant 0 : i32
    %c0_i32_0 = arith.constant 0 : i32
    %c0_i32_1 = arith.constant 0 : i32
    return %c0_i32, %c0_i32_0 : i32, i32
  }
  func.func @transform_3(%arg0: i32, %arg1: i32) -> (i32, i32) {
    %c0_i32 = arith.constant 0 : i32
    %c0_i32_0 = arith.constant 0 : i32
    %c0_i32_1 = arith.constant 0 : i32
    return %c0_i32, %c0_i32_0 : i32, i32
  }
  func.func @transform_4(%arg0: i32, %arg1: i32) -> (i32, i32) {
    %c0_i32 = arith.constant 0 : i32
    %c0_i32_0 = arith.constant 0 : i32
    return %c0_i32, %arg1 : i32, i32
  }
  func.func @transform_5(%arg0: i32, %arg1: i32) -> (i32, i32) {
    %c0_i32 = arith.constant 0 : i32
    %c0_i32_0 = arith.constant 0 : i32
    return %c0_i32, %arg1 : i32, i32
  }
  func.func @transform_6(%arg0: i32, %arg1: i32) -> (i32, i32) {
    %c0_i32 = arith.constant 0 : i32
    return %arg0, %arg1 : i32, i32
  }
  func.func @transform_7(%arg0: i32, %arg1: i32) -> (i32, i32) {
    %c0_i32 = arith.constant 0 : i32
    %c0_i32_0 = arith.constant 0 : i32
    return %arg0, %c0_i32 : i32, i32
  }
}

</mosaic_0001>

<bundles_post_ra>
// kernel: block_forward.1
= control target key start
LH: loop header
LB: loop body
LE: loop exit
PB: predicated region body
PF: predicated region fallthrough
CT: control target
= control target key end

     0   :  { %s2911_s0 = inlined_call_operand.hbm [shape: f32[512,128], index: 0, kind: input, shape index: {}]   ;;  %s2912_s1 = inlined_call_operand.hbm [shape: f32[512,128], index: 1, kind: input, shape index: {}]   ;;  %s2913_s2 = inlined_call_operand.vmem [shape: f32[1,128], index: 2, kind: input, shape index: {}]   ;;  %s2914_s3 = inlined_call_operand.vmem [shape: f32[1,128], index: 3, kind: input, shape index: {}]   ;;  %s2915_s4 = inlined_call_operand.hbm [shape: bf16[128,128], index: 4, kind: input, shape index: {}]   ;;  %s2916_s5 = inlined_call_operand.vmem [shape: f32[1,128], index: 5, kind: input, shape index: {}]   ;;  %s2917_s6 = inlined_call_operand.hbm [shape: f32[512,128], index: 6, kind: output, shape index: {0}]   ;;  %s2918_s7 = inlined_call_operand.hbm [shape: f32[512,128], index: 7, kind: output, shape index: {1}]  }
   0x1   :  { %2926 = sst [smem:[#allocation21_spill]] %s2911_s0 }
   0x2   :  { %2927 = sst [smem:[#allocation22_spill]] %s2915_s4 }
   0x3   :  { %13 = vsyncpa [#allocation4], 0 }
   0x4   :  { %15 = vsyncpa [#allocation4 + $0x1], 0 }
   0x5   :  { %16 = vsyncpa [#allocation7], 0 }
   0x6   :  { %18 = vsyncpa [#allocation7 + $0x1], 0 }
   0x7   :  { %19 = vsyncpa [#allocation5], 0 }
   0x8   :  { %21 = vsyncpa [#allocation5 + $0x1], 0 }
   0x9   :  { %22 = vsyncpa [#allocation11], 0 }
   0xa   :  { %24 = vsyncpa [#allocation11 + $0x1], 0  ;;  %s2027_s24 = smov 0   ;;  %s2029_s25 = smov 0  }
   0xb   :  { %s2031_s26 = smov 0   ;;  %s2033_s27 = smov 0  }
   0xc   :  { %s2035_s28 = smov 0   ;;  %s2037_s29 = smov 0  }
   0xd LB: > { %2928 = sst [smem:[#allocation17_spill]] %s1962_s26  ;;  %s2058_s30 = sadd.s32 4294967295, %s1974_s29   ;;  %s1974_s29 = sphi %s2037_s29, %s30_s29   ;;  %s1970_s28 = sphi %s2035_s28, %s2956_s28   ;;  %s1966_s27 = sphi %s2033_s27, %s2955_s27   ;;  %s1962_s26 = sphi %s2031_s26, %s2951_s26   ;;  %s1958_s25 = sphi %s2029_s25, %s2954_s25   ;;  %s1954_s24 = sphi %s2027_s24, %s2953_s24  }
   0xe   : > { %s1475_s8 = sadd.s32 4294967294, %s1974_s29   ;;  %p62_p0 = scmp.ne.s32.totalorder %s1958_s25, %s1954_s24 }
   0xf   : > { %p2919_p1 = scmp.eq.s32.totalorder %s2058_s30, 0  ;;  %p214_p3 = scmp.eq.s32.totalorder %s1475_s8, 1 }
  0x10   : > { %p1476_p5 = scmp.ge.s32.totalorder %s1974_s29, 1  ;;  %p247_p7 = scmp.lt.s32.totalorder %s1974_s29, 3 }
  0x11   : > { %p2067_p4 = por %p2919_p1, %p62_p0  ;;  %p2072_p6 = por %p214_p3, %p62_p0 }
  0x12   : > { %p2077_p8 = pnand %p1476_p5, %p247_p7  ;;  %s1976_s12 = smov [#allocation8]  }
  0x13   : > { %s2929_s9 = scalar_select %p2067_p4, 1, 0 }
  0x14   : > { %s2930_s10 = scalar_select %p2072_p6, 1, 0 }
  0x15   : > { %s2932_s11 = scalar_select %p2077_p8, 1, 0 }
  0x16   : > { %2931 = sst [smem:[#allocation18_spill]] %s2930_s10  ;;  %s267_s13 = sshll.u32 %s1976_s12, 4  ;;  %s268_s13 = int_to_ptr.vmem [resolvable:$true] %s267_s13 }
  0x17   : > { %p1615_p9 = pneg %p2077_p8  ;;  %s42_s15 = sadd.s32 1, %s1970_s28 }
  0x18   : > { %s2934_s4 = sld [smem:[#allocation22_spill]] }
  0x19   : > { %p2086_p11 = pnand %p1615_p9, %p2919_p1 }
  0x1b   : > { %p1766_p13 = pneg %p2086_p11 }
  0x1e   : > { %s1764_s18 = scalar_lea.hbm %s2934_s4, 1024 }
  0x1f   : > { %p1765_p12 = scmp.ne.s32.totalorder %s2934_s4, %s1764_s18  ;;  %p1771_p5 = scmp.lt.u32.totalorder %s1764_s18, %s2934_s4 }
  0x21   : > { %p1767_p0 = pnand %p1766_p13, %p1765_p12 }
  0x23   : > { %p1768_p3 = pneg %p1767_p0 }
  0x25   : > { %p1773_p7 = pnand %p1771_p5, %p1768_p3 }
  0x27   : > { %1776 = shalt.err (!%p1773_p7)
}
  0x28   : > { %s1777_s23 = scalar_lea.vmem %s268_s13, 1024  ;;  %p1785_p2 = scmp.lt.s32.totalorder %s268_s13, %s268_s13 }
  0x29   : > { %p1778_p9 = scmp.ne.s32.totalorder %s268_s13, %s1777_s23  ;;  %p1786_p6 = scmp.lt.s32.totalorder %s1777_s23, %s1777_s23 }
  0x2b   : > { %p1780_p10 = pnand %p1778_p9, %p1766_p13  ;;  %p1787_p4 = por %p1786_p6, %p1785_p2 }
  0x2d   : > { %p1781_p1 = pneg %p1780_p10 }
  0x2f   : > { %p1788_p8 = pnand %p1787_p4, %p1781_p1 }
  0x31   : > { %1791 = shalt.err (!%p1788_p8)
}
  0x32   : > { %s1977_s8 = smov 64   ;;  %s1978_s12 = smov 4  }
  0x33   : > { %1618 = dma.hbm_to_vmem [thread:$0]  (!%p2086_p11), %s2934_s4, 1024, %s268_s13, [#allocation7], %s1977_s8, %s1977_s8, %s1978_s12  }
  0x34   : > { %p44_p1 = scmp.ge.s32.totalorder %s42_s15, 2  ;;  %s49_s18 = sadd.s32 1, %s1962_s26 }
  0x35   : > { %p56_p2 = scmp.ne.s32.totalorder %s1962_s26, %s1958_s25  ;;  %p57_p4 = scmp.eq.s32.totalorder %s1974_s29, 0 }
  0x36   : > { %s2958_s15 = smov (%p44_p1, %s42_s15), 0  ;;  %p2937_p8 = scmp.eq.s32.totalorder %s2058_s30, 1 }
  0x37   : > { %2935 = sst [smem:[#allocation19_spill]] %s2958_s15  ;;  %p2113_p6 = por %p57_p4, %p56_p2 }
  0x38   : > { %p2119_p10 = por %p2937_p8, %p56_p2  ;;  %s46_s20 = ssub.s32 %s1970_s28, %s2958_s15 }
  0x39   : > { %p1634_p12 = scmp.lt.s32.totalorder %s1974_s29, 2  ;;  %p47_p11 = scmp.eq.s32.totalorder %s46_s20, 0 }
  0x3a   : > { %s287_s13 = sand.u32 1, %s1962_s26   ;;  %s2922_s23 = sshll.u32 %s1970_s28, 12 }
  0x3b   : > { %s2127_s21 = sshll.u32 %s287_s13, 8  ;;  %s2940_s0 = sld [smem:[#allocation21_spill]] }
  0x3c   : > { %s2130_s22 = scalar_select %p47_p11, %s1962_s26, %s49_s18  }
  0x3d   : > { %s291_s17 = scalar_lea.vmem [#allocation3], %s2127_s21  ;;  %p2145_p13 = pnand %p1634_p12, %p2113_p6 }
  0x3e   : > { %2939 = sst [smem:[#allocation20_spill]] %s2130_s22  ;;  %s298_s4 = sshll.u32 %s291_s17, 4  ;;  %s2141_s4 = int_to_ptr.vmem [resolvable:$true] %s298_s4 }
  0x3f   : > { %s2149_s18 = scalar_lea.sflag [#allocation4], %s287_s13  ;;  %p1794_p3 = pneg %p2145_p13 }
  0x41   : > { %s2138_s16 = scalar_lea.hbm %s2940_s0, %s2922_s23  ;;  %s1797_s19 = scalar_lea.hbm %s2940_s0, 8192 }
  0x42   : > { %s1792_s8 = scalar_lea.hbm %s2138_s16, 4096  ;;  %p1798_p9 = scmp.lt.u32.totalorder %s2138_s16, %s2940_s0 }
  0x43   : > { %p1793_p0 = scmp.ne.s32.totalorder %s2138_s16, %s1792_s8  ;;  %p1799_p1 = scmp.lt.u32.totalorder %s1797_s19, %s1792_s8 }
  0x44   : > { %p1801_p4 = scmp.lt.u32.totalorder %s1792_s8, %s2138_s16 }
  0x45   : > { %p1795_p5 = pnand %p1794_p3, %p1793_p0  ;;  %p1800_p2 = por %p1799_p1, %p1798_p9 }
  0x47   : > { %p1796_p7 = pneg %p1795_p5  ;;  %p1802_p6 = por %p1801_p4, %p1800_p2 }
  0x49   : > { %p1803_p8 = pnand %p1802_p6, %p1796_p7 }
  0x4b   : > { %1806 = shalt.err (!%p1803_p8)
}
  0x4c   : > { %s1807_s13 = scalar_lea.vmem %s2141_s4, 4096  ;;  %s1979_s12 = smov [#allocation3]  }
  0x4d   : > { %p1808_p12 = scmp.ne.s32.totalorder %s2141_s4, %s1807_s13  ;;  %s1812_s17 = sshll.u32 %s1979_s12, 4  ;;  %s1813_s17 = int_to_ptr.vmem [resolvable:$false] %s1812_s17 }
  0x4e   : > { %s1814_s15 = scalar_lea.vmem %s1813_s17, 8192  ;;  %p1815_p5 = scmp.lt.s32.totalorder %s2141_s4, %s1813_s17 }
  0x4f   : > { %p1810_p11 = pnand %p1808_p12, %p1794_p3  ;;  %p1816_p9 = scmp.lt.s32.totalorder %s1814_s15, %s1807_s13 }
  0x51   : > { %p1811_p0 = pneg %p1810_p11  ;;  %p1817_p1 = por %p1816_p9, %p1815_p5 }
  0x53   : > { %p1818_p2 = pnand %p1817_p1, %p1811_p0 }
  0x55   : > { %1821 = shalt.err (!%p1818_p2)
}
  0x56   : > { %s1980_s23 = smov 128   ;;  %s1981_s8 = smov 8  }
  0x57   : > { %1622 = dma.hbm_to_vmem [thread:$0]  (!%p2145_p13), %s2138_s16, 4096, %s2141_s4, %s2149_s18, %s1980_s23, %s1980_s23, %s1981_s8  }
  0x58   : > { %s2942_s19 = sshll.u32 %s1970_s28, 12  ;;  %s312_s15 = scalar_lea.vmem [#allocation6], %s2127_s21 }
  0x59   : > { %s2185_s17 = scalar_lea.hbm %s2912_s1, %s2942_s19  ;;  %s319_s0 = sshll.u32 %s312_s15, 4  ;;  %s2188_s0 = int_to_ptr.vmem [resolvable:$true] %s319_s0 }
  0x5a   : > { %s308_s22 = sand.u32 1, %s1974_s29   ;;  %s1822_s10 = scalar_lea.hbm %s2185_s17, 4096 }
  0x5b   : > { %s2191_s26 = scalar_lea.sflag [#allocation7], %s308_s22  ;;  %p1823_p7 = scmp.ne.s32.totalorder %s2185_s17, %s1822_s10 }
  0x5c   : > { %s1827_s18 = scalar_lea.hbm %s2912_s1, 8192  ;;  %p1828_p8 = scmp.lt.u32.totalorder %s2185_s17, %s2912_s1 }
  0x5d   : > { %p1825_p4 = pnand %p1823_p7, %p1794_p3  ;;  %p1829_p12 = scmp.lt.u32.totalorder %s1827_s18, %s1822_s10 }
  0x5e   : > { %p1831_p0 = scmp.lt.u32.totalorder %s1822_s10, %s2185_s17 }
  0x5f   : > { %p1826_p6 = pneg %p1825_p4  ;;  %p1830_p11 = por %p1829_p12, %p1828_p8 }
  0x61   : > { %p1832_p5 = por %p1831_p0, %p1830_p11 }
  0x63   : > { %p1833_p9 = pnand %p1832_p5, %p1826_p6 }
  0x65   : > { %1836 = shalt.err (!%p1833_p9)
}
  0x66   : > { %s1837_s21 = scalar_lea.vmem %s2188_s0, 4096  ;;  %s1982_s22 = smov [#allocation6]  }
  0x67   : > { %p1838_p1 = scmp.ne.s32.totalorder %s2188_s0, %s1837_s21  ;;  %s1842_s12 = sshll.u32 %s1982_s22, 4  ;;  %s1843_s12 = int_to_ptr.vmem [resolvable:$false] %s1842_s12 }
  0x68   : > { %s1844_s15 = scalar_lea.vmem %s1843_s12, 8192  ;;  %p1845_p4 = scmp.lt.s32.totalorder %s2188_s0, %s1843_s12 }
  0x69   : > { %p1840_p2 = pnand %p1838_p1, %p1794_p3  ;;  %p1846_p8 = scmp.lt.s32.totalorder %s1844_s15, %s1837_s21 }
  0x6b   : > { %p1841_p7 = pneg %p1840_p2  ;;  %p1847_p12 = por %p1846_p8, %p1845_p4 }
  0x6d   : > { %p1848_p11 = pnand %p1847_p12, %p1841_p7 }
  0x6f   : > { %1851 = shalt.err (!%p1848_p11)
}
  0x70   : > { %1625 = dma.hbm_to_vmem [thread:$0]  (!%p2145_p13), %s2185_s17, 4096, %s2188_s0, %s2191_s26, %s1980_s23, %s1980_s23, %s1981_s8  }
  0x71   : > { %p2943_p3 = scmp.ne.s32.totalorder %s2932_s11, 0 }
  0x72   : > { %s2223_s10 = sand.u32 (!%p2943_p3), 1, %s1958_s25   ;;  %p2944_p6 = scmp.ne.s32.totalorder (!%p2943_p3), %s2929_s9, 0 }
  0x73   : > { %331 = sbr.rel (%p2943_p3) target bundleno = 741 (0x2e5), region = 44  ;;  %s2226_s4 = sshll.u32 (!%p2943_p3), %s2223_s10, 8 }
  0x74   : > { %s334_s20 = scalar_lea.sflag (!%p2943_p3), [#allocation4], %s2223_s10  ;;  %s2230_s16 = scalar_lea.vmem (!%p2943_p3), [#allocation3], %s2226_s4 }
  0x7a   : > { %1933 = dma.done.wait (%p2944_p6), %s334_s20, 4096  }
  0x7b   : > { %1935 = vsyncadd (%p2944_p6), %s334_s20, 4294963200  ;;  %s342_s0 = sand.u32 1, %s2058_s30   ;;  %s2238_s11 = scalar_lea.vmem [#allocation6], %s2226_s4 }
  0x7c   : > { %s343_s26 = scalar_lea.sflag [#allocation7], %s342_s0 }
  0x7d   : > { %1937 = dma.done.wait (%p2944_p6), %s343_s26, 4096  }
  0x7e   : > { %1939 = vsyncadd (%p2944_p6), %s343_s26, 4294963200  ;;  %p2945_p13 = scmp.eq.s32.totalorder %s2058_s30, 0 }
  0x80   : > { %1941 = dma.done.wait (%p2945_p13), [#allocation7], 1024   ;;  %p2946_p0 = pmov %p2945_p13 }
  0x81   : > { %v406_v0 = vld [vmem:[%s2230_s16] sm:$0xff]  ;;  %v407_v5 = vld [vmem:[%s2230_s16 + $0x8] sm:$0xff]  ;;  %v408_v11 = vld [vmem:[%s2230_s16 + $0x10] sm:$0xff]  ;;  %s2265_s30 = scalar_lea.vmem [#allocation10], %s2226_s4  ;;  %s1513_s18 = sshll.u32 %s1966_s27, 12 }
  0x82   : > { %1943 = vsyncadd (%p2946_p0), [#allocation7], 4294966272  ;;  %v438_v1 = vld [vmem:[%s2238_s11] sm:$0xff]  ;;  %v439_v6 = vld [vmem:[%s2238_s11 + $0x8] sm:$0xff]  ;;  %s2747_s21 = scalar_lea.hbm %s2918_s7, %s1513_s18  ;;  %s1313_s22 = sshll.u32 %s2265_s30, 4  ;;  %s2750_s22 = int_to_ptr.vmem [resolvable:$true] %s1313_s22 }
  0x83   : > { %v422_v2 = vld [vmem:[%s2230_s16 + $0x80] sm:$0xff]  ;;  %v2251_v3 = vadd.f32 %v438_v1, %v406_v0  ;;  %v2258_v8 = vadd.f32 %v439_v6, %v407_v5  ;;  %v423_v9 = vld [vmem:[%s2230_s16 + $0x88] sm:$0xff]  ;;  %v440_v13 = vld [vmem:[%s2238_s11 + $0x10] sm:$0xff]  ;;  %s1283_s12 = scalar_lea.sflag [#allocation11], %s2223_s10  ;;  %s1852_s15 = scalar_lea.vmem %s2750_s22, 4096 }
  0x84   : > { %v454_v4 = vld [vmem:[%s2238_s11 + $0x80] sm:$0xff]  ;;  %v455_v10 = vld [vmem:[%s2238_s11 + $0x88] sm:$0xff]  ;;  %v409_v14 = vld [vmem:[%s2230_s16 + $0x18] sm:$0xff]  ;;  %v2279_v16 = vadd.f32 %v440_v13, %v408_v11  ;;  %p1853_p5 = scmp.ne.s32.totalorder %s2750_s22, %s1852_s15  ;;  %s1983_s20 = smov [#allocation10]  }
  0x85   : > { %v2256_v7 = vadd.f32 %v454_v4, %v422_v2  ;;  %534 = vadd.xlane.f32.xlu0 %v2251_v3  ;;  %502 = vst [vmem:[%s2265_s30] sm:$0xff] %v2251_v3  ;;  %v2269_v12 = vadd.f32 %v455_v10, %v423_v9  ;;  %v441_v15 = vld [vmem:[%s2238_s11 + $0x18] sm:$0xff]  ;;  %503 = vst [vmem:[%s2265_s30 + $0x8] sm:$0xff] %v2258_v8  ;;  %v424_v18 = vld [vmem:[%s2230_s16 + $0x90] sm:$0xff] }
  0x86   : > { %v2281_v17 = vadd.f32 %v441_v15, %v409_v14  ;;  %v456_v19 = vld [vmem:[%s2238_s11 + $0x90] sm:$0xff]  ;;  %v425_v20 = vld [vmem:[%s2230_s16 + $0x98] sm:$0xff]  ;;  %v410_v23 = vld [vmem:[%s2230_s16 + $0x20] sm:$0xff]  ;;  %504 = vst [vmem:[%s2265_s30 + $0x10] sm:$0xff] %v2279_v16  ;;  %p1854_p9 = pnand %p1853_p5, %p2119_p10 }
  0x87   : > { %566 = vadd.xlane.f32.xlu1 %v2256_v7  ;;  %518 = vst [vmem:[%s2265_s30 + $0x80] sm:$0xff] %v2256_v7  ;;  %519 = vst [vmem:[%s2265_s30 + $0x88] sm:$0xff] %v2269_v12  ;;  %v2288_v21 = vadd.f32 %v456_v19, %v424_v18  ;;  %v457_v22 = vld [vmem:[%s2238_s11 + $0x98] sm:$0xff]  ;;  %v442_v24 = vld [vmem:[%s2238_s11 + $0x20] sm:$0xff] }
  0x88   : > { %505 = vst [vmem:[%s2265_s30 + $0x18] sm:$0xff] %v2281_v17  ;;  %v2297_v25 = vadd.f32 %v457_v22, %v425_v20  ;;  %v2299_v26 = vadd.f32 %v442_v24, %v410_v23  ;;  %v411_v27 = vld [vmem:[%s2230_s16 + $0x28] sm:$0xff]  ;;  %v426_v29 = vld [vmem:[%s2230_s16 + $0xa0] sm:$0xff]  ;;  %v412_v36 = vld [vmem:[%s2230_s16 + $0x30] sm:$0xff]  ;;  %p1855_p1 = pneg %p1854_p9 }
  0x89   : > { %v443_v28 = vld [vmem:[%s2238_s11 + $0x28] sm:$0xff]  ;;  %536 = vadd.xlane.f32.xlu0 %v2258_v8  ;;  %520 = vst [vmem:[%s2265_s30 + $0x90] sm:$0xff] %v2288_v21  ;;  %v458_v31 = vld [vmem:[%s2238_s11 + $0xa0] sm:$0xff]  ;;  %v444_v37 = vld [vmem:[%s2238_s11 + $0x30] sm:$0xff] }
  0x8a   : > { %v2307_v30 = vadd.f32 %v443_v28, %v411_v27  ;;  %v427_v32 = vld [vmem:[%s2230_s16 + $0xa8] sm:$0xff]  ;;  %521 = vst [vmem:[%s2265_s30 + $0x98] sm:$0xff] %v2297_v25  ;;  %506 = vst [vmem:[%s2265_s30 + $0x20] sm:$0xff] %v2299_v26  ;;  %v2317_v34 = vadd.f32 %v458_v31, %v426_v29  ;;  %v413_v38 = vld [vmem:[%s2230_s16 + $0x38] sm:$0xff]  ;;  %v2326_v39 = vadd.f32 %v444_v37, %v412_v36 }
  0x8b   : > { %v459_v33 = vld [vmem:[%s2238_s11 + $0xa8] sm:$0xff]  ;;  %568 = vadd.xlane.f32.xlu1 %v2269_v12  ;;  %v445_v40 = vld [vmem:[%s2238_s11 + $0x38] sm:$0xff]  ;;  %v428_v41 = vld [vmem:[%s2230_s16 + $0xb0] sm:$0xff] }
  0x8c   : > { %v2319_v35 = vadd.f32 %v459_v33, %v427_v32  ;;  %507 = vst [vmem:[%s2265_s30 + $0x28] sm:$0xff] %v2307_v30  ;;  %v460_v42 = vld [vmem:[%s2238_s11 + $0xb0] sm:$0xff]  ;;  %522 = vst [vmem:[%s2265_s30 + $0xa0] sm:$0xff] %v2317_v34  ;;  %v2335_v43 = vadd.f32 %v445_v40, %v413_v38  ;;  %v429_v45 = vld [vmem:[%s2230_s16 + $0xb8] sm:$0xff] }
  0x8d   : > { %v2337_v44 = vadd.f32 %v460_v42, %v428_v41  ;;  %v461_v46 = vld [vmem:[%s2238_s11 + $0xb8] sm:$0xff]  ;;  %v414_v47 = vld [vmem:[%s2230_s16 + $0x40] sm:$0xff]  ;;  %538 = vadd.xlane.f32.xlu0 %v2279_v16  ;;  %508 = vst [vmem:[%s2265_s30 + $0x30] sm:$0xff] %v2326_v39  ;;  %v415_v50 = vld [vmem:[%s2230_s16 + $0x48] sm:$0xff] }
  0x8e   : > { %523 = vst [vmem:[%s2265_s30 + $0xa8] sm:$0xff] %v2319_v35  ;;  %v2345_v48 = vadd.f32 %v461_v46, %v429_v45  ;;  %v446_v49 = vld [vmem:[%s2238_s11 + $0x40] sm:$0xff]  ;;  %v447_v51 = vld [vmem:[%s2238_s11 + $0x48] sm:$0xff]  ;;  %509 = vst [vmem:[%s2265_s30 + $0x38] sm:$0xff] %v2335_v43 }
  0x8f   : > { %540 = vadd.xlane.f32.xlu1 %v2281_v17  ;;  %524 = vst [vmem:[%s2265_s30 + $0xb0] sm:$0xff] %v2337_v44  ;;  %v2355_v52 = vadd.f32 %v446_v49, %v414_v47  ;;  %v2357_v53 = vadd.f32 %v447_v51, %v415_v50  ;;  %v430_v54 = vld [vmem:[%s2230_s16 + $0xc0] sm:$0xff]  ;;  %v431_v56 = vld [vmem:[%s2230_s16 + $0xc8] sm:$0xff]  ;;  %v416_v59 = vld [vmem:[%s2230_s16 + $0x50] sm:$0xff] }
  0x90   : > { %v462_v55 = vld [vmem:[%s2238_s11 + $0xc0] sm:$0xff]  ;;  %525 = vst [vmem:[%s2265_s30 + $0xb8] sm:$0xff] %v2345_v48  ;;  %v463_v58 = vld [vmem:[%s2238_s11 + $0xc8] sm:$0xff]  ;;  %v448_v60 = vld [vmem:[%s2238_s11 + $0x50] sm:$0xff] }
  0x91   : > { %v2364_v57 = vadd.f32 %v462_v55, %v430_v54  ;;  %510 = vst [vmem:[%s2265_s30 + $0x40] sm:$0xff] %v2355_v52  ;;  %511 = vst [vmem:[%s2265_s30 + $0x48] sm:$0xff] %v2357_v53  ;;  %v2373_v61 = vadd.f32 %v463_v58, %v431_v56  ;;  %v2375_v62 = vadd.f32 %v448_v60, %v416_v59  ;;  %v417_v63 = vld [vmem:[%s2230_s16 + $0x58] sm:$0xff]  ;;  %v432_v1 = vld [vmem:[%s2230_s16 + $0xd0] sm:$0xff]  ;;  %570 = vadd.xlane.f32.xlu0 %v2288_v21 }
  0x92   : > { %v449_v0 = vld [vmem:[%s2238_s11 + $0x58] sm:$0xff]  ;;  %v464_v4 = vld [vmem:[%s2238_s11 + $0xd0] sm:$0xff]  ;;  %v418_v11 = vld [vmem:[%s2230_s16 + $0x60] sm:$0xff] }
  0x93   : > { %526 = vst [vmem:[%s2265_s30 + $0xc0] sm:$0xff] %v2364_v57  ;;  %v2383_v2 = vadd.f32 %v449_v0, %v417_v63  ;;  %v433_v5 = vld [vmem:[%s2230_s16 + $0xd8] sm:$0xff]  ;;  %572 = vadd.xlane.f32.xlu1 %v2297_v25  ;;  %527 = vst [vmem:[%s2265_s30 + $0xc8] sm:$0xff] %v2373_v61  ;;  %v2393_v9 = vadd.f32 %v464_v4, %v432_v1  ;;  %v450_v13 = vld [vmem:[%s2238_s11 + $0x60] sm:$0xff] }
  0x94   : > { %v465_v6 = vld [vmem:[%s2238_s11 + $0xd8] sm:$0xff]  ;;  %512 = vst [vmem:[%s2265_s30 + $0x50] sm:$0xff] %v2375_v62  ;;  %v419_v14 = vld [vmem:[%s2230_s16 + $0x68] sm:$0xff]  ;;  %v2402_v15 = vadd.f32 %v450_v13, %v418_v11  ;;  %v434_v19 = vld [vmem:[%s2230_s16 + $0xe0] sm:$0xff] }
  0x95   : > { %v2395_v10 = vadd.f32 %v465_v6, %v433_v5  ;;  %513 = vst [vmem:[%s2265_s30 + $0x58] sm:$0xff] %v2383_v2  ;;  %v451_v18 = vld [vmem:[%s2238_s11 + $0x68] sm:$0xff]  ;;  %v466_v20 = vld [vmem:[%s2238_s11 + $0xe0] sm:$0xff]  ;;  %528 = vst [vmem:[%s2265_s30 + $0xd0] sm:$0xff] %v2393_v9  ;;  %542 = vadd.xlane.f32.xlu0 %v2299_v26 }
  0x96   : > { %v2411_v22 = vadd.f32 %v451_v18, %v419_v14  ;;  %v2413_v23 = vadd.f32 %v466_v20, %v434_v19  ;;  %v435_v24 = vld [vmem:[%s2230_s16 + $0xe8] sm:$0xff]  ;;  %v420_v28 = vld [vmem:[%s2230_s16 + $0x70] sm:$0xff]  ;;  %514 = vst [vmem:[%s2265_s30 + $0x60] sm:$0xff] %v2402_v15  ;;  %v421_v32 = vld [vmem:[%s2230_s16 + $0x78] sm:$0xff] }
  0x97   : > { %529 = vst [vmem:[%s2265_s30 + $0xd8] sm:$0xff] %v2395_v10  ;;  %v467_v27 = vld [vmem:[%s2238_s11 + $0xe8] sm:$0xff]  ;;  %v452_v31 = vld [vmem:[%s2238_s11 + $0x70] sm:$0xff]  ;;  %v453_v33 = vld [vmem:[%s2238_s11 + $0x78] sm:$0xff]  ;;  %544 = vadd.xlane.f32.xlu1 %v2307_v30 }
  0x98   : > { %v2421_v29 = vadd.f32 %v467_v27, %v435_v24  ;;  %515 = vst [vmem:[%s2265_s30 + $0x68] sm:$0xff] %v2411_v22  ;;  %530 = vst [vmem:[%s2265_s30 + $0xe0] sm:$0xff] %v2413_v23  ;;  %v2431_v36 = vadd.f32 %v452_v31, %v420_v28  ;;  %v2433_v37 = vadd.f32 %v453_v33, %v421_v32  ;;  %v436_v38 = vld [vmem:[%s2230_s16 + $0xf0] sm:$0xff]  ;;  %v437_v41 = vld [vmem:[%s2230_s16 + $0xf8] sm:$0xff]  ;;  %s1856_s16 = sshll.u32 %s1983_s20, 4  ;;  %s1857_s16 = int_to_ptr.vmem [resolvable:$false] %s1856_s16 }
  0x99   : > { %v468_v40 = vld [vmem:[%s2238_s11 + $0xf0] sm:$0xff]  ;;  %v469_v45 = vld [vmem:[%s2238_s11 + $0xf8] sm:$0xff]  ;;  %574 = vadd.xlane.f32.xlu0 %v2317_v34  ;;  %s1858_s0 = scalar_lea.vmem %s1857_s16, 8192  ;;  %p1859_p2 = scmp.lt.s32.totalorder %s2750_s22, %s1857_s16 }
  0x9a   : > { %531 = vst [vmem:[%s2265_s30 + $0xe8] sm:$0xff] %v2421_v29  ;;  %v2440_v42 = vadd.f32 %v468_v40, %v436_v38  ;;  %516 = vst [vmem:[%s2265_s30 + $0x70] sm:$0xff] %v2431_v36  ;;  %v2447_v46 = vadd.f32 %v469_v45, %v437_v41  ;;  %p1860_p7 = scmp.lt.s32.totalorder %s1858_s0, %s1852_s15 }
  0x9b   : > { %517 = vst [vmem:[%s2265_s30 + $0x78] sm:$0xff] %v2433_v37  ;;  %576 = vadd.xlane.f32.xlu1 %v2319_v35 }
  0x9c   : > { %532 = vst [vmem:[%s2265_s30 + $0xf0] sm:$0xff] %v2440_v42  ;;  %533 = vst [vmem:[%s2265_s30 + $0xf8] sm:$0xff] %v2447_v46  ;;  %p1861_p4 = por %p1860_p7, %p1859_p2 }
  0x9d   : > { %546 = vadd.xlane.f32.xlu0 %v2326_v39 }
  0x9e   : > { %p1862_p8 = pnand %p1861_p4, %p1855_p1 }
  0x9f   : > { %548 = vadd.xlane.f32.xlu1 %v2335_v43 }
  0xa1   : > { %578 = vadd.xlane.f32.xlu0 %v2337_v44 }
  0xa3   : > { %580 = vadd.xlane.f32.xlu1 %v2345_v48 }
  0xa5   : > { %550 = vadd.xlane.f32.xlu0 %v2355_v52 }
  0xa7   : > { %552 = vadd.xlane.f32.xlu1 %v2357_v53 }
  0xa9   : > { %582 = vadd.xlane.f32.xlu0 %v2364_v57 }
  0xab   : > { %584 = vadd.xlane.f32.xlu1 %v2373_v61 }
  0xad   : > { %554 = vadd.xlane.f32.xlu0 %v2375_v62 }
  0xaf   : > { %556 = vadd.xlane.f32.xlu1 %v2383_v2 }
  0xb1   : > { %586 = vadd.xlane.f32.xlu0 %v2393_v9 }
  0xb3   : > { %588 = vadd.xlane.f32.xlu1 %v2395_v10 }
  0xb5   : > { %558 = vadd.xlane.f32.xlu0 %v2402_v15 }
  0xb7   : > { %560 = vadd.xlane.f32.xlu1 %v2411_v22 }
  0xb9   : > { %590 = vadd.xlane.f32.xlu0 %v2413_v23 }
  0xbb   : > { %592 = vadd.xlane.f32.xlu1 %v2421_v29 }
  0xbd   : > { %562 = vadd.xlane.f32.xlu0 %v2431_v36 }
  0xbf   : > { %564 = vadd.xlane.f32.xlu1 %v2433_v37 }
  0xc1   : > { %594 = vadd.xlane.f32.xlu0 %v2440_v42 }
  0xc3   : > { %596 = vadd.xlane.f32.xlu1 %v2447_v46 }
 0x112   : > { %v535_v47 = vpop.xlane.xlu0 %534 }
 0x113   : > { %v599_v49 = vmul.f32 0.0078125, %v535_v47 }
 0x114   : > { %v567_v50 = vpop.xlane.xlu1 %566 }
 0x115   : > { %v615_v51 = vmul.f32 0.0078125, %v567_v50  ;;  %v2476_v54 = vsub.f32 %v2251_v3, %v599_v49 }
 0x116   : > { %v537_v56 = vpop.xlane.xlu0 %536 }
 0x117   : > { %v2479_v55 = vsub.f32 %v2256_v7, %v615_v51  ;;  %v600_v58 = vmul.f32 0.0078125, %v537_v56  ;;  %v663_v59 = vmul.f32 %v2476_v54, %v2476_v54  ;;  %v1692_v51 = vld [vmem:[#allocation8] sm:$0xff]  }
 0x118   : > { %v569_v60 = vpop.xlane.xlu1 %568  ;;  %1539 = vmatprep.subr.bf16.mxu0 %v1692_v51  ;;  %1587 = vmatprep.subr.bf16.mxu1 %v1692_v51 }
 0x119   : > { %v616_v63 = vmul.f32 0.0078125, %v569_v60  ;;  %v2484_v0 = vsub.f32 %v2258_v8, %v600_v58  ;;  %695 = vadd.xlane.f32.xlu0 %v663_v59  ;;  %v679_v1 = vmul.f32 %v2479_v55, %v2479_v55  ;;  %1540 = vmatpush3.bf16.msra.mxu0 %v1692_v51 }
 0x11a   : > { %v539_v4 = vpop.xlane.xlu0 %538  ;;  %1595 = vmatpush3.bf16.msra.mxu1 %v1692_v51 }
 0x11b   : > { %v2489_v3 = vsub.f32 %v2269_v12, %v616_v63  ;;  %v601_v7 = vmul.f32 0.0078125, %v539_v4  ;;  %v664_v5 = vmul.f32 %v2484_v0, %v2484_v0  ;;  %v1693_v4 = vld [vmem:[#allocation8 + $0x8] sm:$0xff]  }
 0x11c   : > { %v541_v6 = vpop.xlane.xlu1 %540  ;;  %1541 = vmatprep.subr.bf16.mxu0 %v1693_v4  ;;  %1588 = vmatprep.subr.bf16.mxu1 %v1693_v4 }
 0x11d   : > { %v602_v11 = vmul.f32 0.0078125, %v541_v6  ;;  %v2494_v13 = vsub.f32 %v2279_v16, %v601_v7  ;;  %727 = vadd.xlane.f32.xlu0 %v679_v1  ;;  %697 = vadd.xlane.f32.xlu1 %v664_v5  ;;  %v680_v8 = vmul.f32 %v2489_v3, %v2489_v3 }
 0x11e   : > { %v571_v12 = vpop.xlane.xlu0 %570  ;;  %1542 = vmatpush3.bf16.msra.mxu0 %v1693_v4  ;;  %1596 = vmatpush3.bf16.msra.mxu1 %v1693_v4 }
 0x11f   : > { %v2499_v14 = vsub.f32 %v2281_v17, %v602_v11  ;;  %v617_v18 = vmul.f32 0.0078125, %v571_v12  ;;  %v665_v19 = vmul.f32 %v2494_v13, %v2494_v13 }
 0x120   : > { %v573_v20 = vpop.xlane.xlu1 %572 }
 0x121   : > { %v618_v24 = vmul.f32 0.0078125, %v573_v20  ;;  %v2504_v27 = vsub.f32 %v2288_v21, %v617_v18  ;;  %729 = vadd.xlane.f32.xlu1 %v680_v8  ;;  %699 = vadd.xlane.f32.xlu0 %v665_v19  ;;  %v666_v16 = vmul.f32 %v2499_v14, %v2499_v14  ;;  %v1694_v18 = vld [vmem:[#allocation8 + $0x10] sm:$0xff]  }
 0x122   : > { %v543_v17 = vpop.xlane.xlu0 %542  ;;  %1543 = vmatprep.subr.bf16.mxu0 %v1694_v18  ;;  %1589 = vmatprep.subr.bf16.mxu1 %v1694_v18 }
 0x123   : > { %v2509_v28 = vsub.f32 %v2297_v25, %v618_v24  ;;  %v603_v31 = vmul.f32 0.0078125, %v543_v17  ;;  %v681_v32 = vmul.f32 %v2504_v27, %v2504_v27  ;;  %1544 = vmatpush3.bf16.msra.mxu0 %v1694_v18  ;;  %1597 = vmatpush3.bf16.msra.mxu1 %v1694_v18 }
 0x124   : > { %v545_v33 = vpop.xlane.xlu1 %544 }
 0x125   : > { %v604_v38 = vmul.f32 0.0078125, %v545_v33  ;;  %v2514_v40 = vsub.f32 %v2299_v26, %v603_v31  ;;  %701 = vadd.xlane.f32.xlu1 %v666_v16  ;;  %731 = vadd.xlane.f32.xlu0 %v681_v32  ;;  %v682_v21 = vmul.f32 %v2509_v28, %v2509_v28  ;;  %v1695_v32 = vld [vmem:[#allocation8 + $0x18] sm:$0xff]  }
 0x126   : > { %v575_v25 = vpop.xlane.xlu0 %574  ;;  %1545 = vmatprep.subr.bf16.mxu0 %v1695_v32  ;;  %1590 = vmatprep.subr.bf16.mxu1 %v1695_v32 }
 0x127   : > { %v2519_v41 = vsub.f32 %v2307_v30, %v604_v38  ;;  %v619_v45 = vmul.f32 0.0078125, %v575_v25  ;;  %v667_v47 = vmul.f32 %v2514_v40, %v2514_v40  ;;  %1546 = vmatpush3.bf16.msra.mxu0 %v1695_v32  ;;  %1598 = vmatpush3.bf16.msra.mxu1 %v1695_v32 }
 0x128   : > { %v577_v49 = vpop.xlane.xlu1 %576 }
 0x129   : > { %v620_v50 = vmul.f32 0.0078125, %v577_v49  ;;  %v2524_v56 = vsub.f32 %v2317_v34, %v619_v45  ;;  %733 = vadd.xlane.f32.xlu1 %v682_v21  ;;  %703 = vadd.xlane.f32.xlu0 %v667_v47  ;;  %v668_v26 = vmul.f32 %v2519_v41, %v2519_v41  ;;  %v1696_v49 = vld [vmem:[#allocation8 + $0x20] sm:$0xff]  }
 0x12a   : > { %v547_v30 = vpop.xlane.xlu0 %546  ;;  %1547 = vmatprep.subr.bf16.mxu0 %v1696_v49  ;;  %1591 = vmatprep.subr.bf16.mxu1 %v1696_v49 }
 0x12b   : > { %v2529_v58 = vsub.f32 %v2319_v35, %v620_v50  ;;  %v605_v59 = vmul.f32 0.0078125, %v547_v30  ;;  %v683_v60 = vmul.f32 %v2524_v56, %v2524_v56  ;;  %1548 = vmatpush3.bf16.msra.mxu0 %v1696_v49  ;;  %1599 = vmatpush3.bf16.msra.mxu1 %v1696_v49 }
 0x12c   : > { %v549_v63 = vpop.xlane.xlu1 %548 }
 0x12d   : > { %v606_v34 = vmul.f32 0.0078125, %v549_v63  ;;  %v2534_v1 = vsub.f32 %v2326_v39, %v605_v59  ;;  %705 = vadd.xlane.f32.xlu1 %v668_v26  ;;  %735 = vadd.xlane.f32.xlu0 %v683_v60  ;;  %v684_v35 = vmul.f32 %v2529_v58, %v2529_v58  ;;  %v1697_v63 = vld [vmem:[#allocation8 + $0x28] sm:$0xff]  }
 0x12e   : > { %v579_v5 = vpop.xlane.xlu0 %578  ;;  %1549 = vmatprep.subr.bf16.mxu0 %v1697_v63  ;;  %1592 = vmatprep.subr.bf16.mxu1 %v1697_v63 }
 0x12f   : > { %v2539_v7 = vsub.f32 %v2335_v43, %v606_v34  ;;  %v621_v6 = vmul.f32 0.0078125, %v579_v5  ;;  %v669_v11 = vmul.f32 %v2534_v1, %v2534_v1  ;;  %1550 = vmatpush3.bf16.msra.mxu0 %v1697_v63  ;;  %1600 = vmatpush3.bf16.msra.mxu1 %v1697_v63 }
 0x130   : > { %v581_v8 = vpop.xlane.xlu1 %580 }
 0x131   : > { %v622_v12 = vmul.f32 0.0078125, %v581_v8  ;;  %v2544_v39 = vsub.f32 %v2337_v44, %v621_v6  ;;  %737 = vadd.xlane.f32.xlu1 %v684_v35  ;;  %707 = vadd.xlane.f32.xlu0 %v669_v11  ;;  %v670_v43 = vmul.f32 %v2539_v7, %v2539_v7  ;;  %v1698_v8 = vld [vmem:[#allocation8 + $0x30] sm:$0xff]  }
 0x132   : > { %v551_v20 = vpop.xlane.xlu0 %550  ;;  %1551 = vmatprep.subr.bf16.mxu0 %v1698_v8  ;;  %1593 = vmatprep.subr.bf16.mxu1 %v1698_v8 }
 0x133   : > { %v2549_v19 = vsub.f32 %v2345_v48, %v622_v12  ;;  %v607_v24 = vmul.f32 0.0078125, %v551_v20  ;;  %v685_v16 = vmul.f32 %v2544_v39, %v2544_v39  ;;  %1552 = vmatpush3.bf16.msra.mxu0 %v1698_v8  ;;  %1601 = vmatpush3.bf16.msra.mxu1 %v1698_v8 }
 0x134   : > { %v553_v17 = vpop.xlane.xlu1 %552 }
 0x135   : > { %v608_v31 = vmul.f32 0.0078125, %v553_v17  ;;  %v2554_v44 = vsub.f32 %v2355_v52, %v607_v24  ;;  %709 = vadd.xlane.f32.xlu1 %v670_v43  ;;  %739 = vadd.xlane.f32.xlu0 %v685_v16  ;;  %v686_v48 = vmul.f32 %v2549_v19, %v2549_v19  ;;  %v1699_v17 = vld [vmem:[#allocation8 + $0x38] sm:$0xff]  }
 0x136   : > { %v583_v38 = vpop.xlane.xlu0 %582  ;;  %1553 = vmatprep.subr.bf16.mxu0 %v1699_v17  ;;  %1594 = vmatprep.subr.bf16.mxu1 %v1699_v17 }
 0x137   : > { %v2559_v33 = vsub.f32 %v2357_v53, %v608_v31  ;;  %v623_v21 = vmul.f32 0.0078125, %v583_v38  ;;  %v671_v25 = vmul.f32 %v2554_v44, %v2554_v44  ;;  %1554 = vmatpush3.bf16.msra.mxu0 %v1699_v17  ;;  %1602 = vmatpush3.bf16.msra.mxu1 %v1699_v17 }
 0x138   : > { %v585_v45 = vpop.xlane.xlu1 %584 }
 0x139   : > { %v624_v47 = vmul.f32 0.0078125, %v585_v45  ;;  %v2564_v52 = vsub.f32 %v2364_v57, %v623_v21  ;;  %741 = vadd.xlane.f32.xlu1 %v686_v48  ;;  %711 = vadd.xlane.f32.xlu0 %v671_v25  ;;  %v672_v53 = vmul.f32 %v2559_v33, %v2559_v33 }
 0x13a   : > { %v555_v51 = vpop.xlane.xlu0 %554 }
 0x13b   : > { %v2569_v50 = vsub.f32 %v2373_v61, %v624_v47  ;;  %v609_v26 = vmul.f32 0.0078125, %v555_v51  ;;  %v687_v30 = vmul.f32 %v2564_v52, %v2564_v52 }
 0x13c   : > { %v557_v59 = vpop.xlane.xlu1 %556 }
 0x13d   : > { %v610_v60 = vmul.f32 0.0078125, %v557_v59  ;;  %v2574_v57 = vsub.f32 %v2375_v62, %v609_v26  ;;  %713 = vadd.xlane.f32.xlu1 %v672_v53  ;;  %743 = vadd.xlane.f32.xlu0 %v687_v30  ;;  %v688_v61 = vmul.f32 %v2569_v50, %v2569_v50 }
 0x13e   : > { %v587_v35 = vpop.xlane.xlu0 %586 }
 0x13f   : > { %v2579_v34 = vsub.f32 %v2383_v2, %v610_v60  ;;  %v625_v4 = vmul.f32 0.0078125, %v587_v35  ;;  %v673_v5 = vmul.f32 %v2574_v57, %v2574_v57 }
 0x140   : > { %v589_v6 = vpop.xlane.xlu1 %588 }
 0x141   : > { %v626_v11 = vmul.f32 0.0078125, %v589_v6  ;;  %v2584_v62 = vsub.f32 %v2393_v9, %v625_v4  ;;  %745 = vadd.xlane.f32.xlu1 %v688_v61  ;;  %715 = vadd.xlane.f32.xlu0 %v673_v5  ;;  %v674_v2 = vmul.f32 %v2579_v34, %v2579_v34 }
 0x142   : > { %v559_v43 = vpop.xlane.xlu0 %558 }
 0x143   : > { %v2589_v12 = vsub.f32 %v2395_v10, %v626_v11  ;;  %v611_v18 = vmul.f32 0.0078125, %v559_v43  ;;  %v689_v20 = vmul.f32 %v2584_v62, %v2584_v62 }
 0x144   : > { %v561_v24 = vpop.xlane.xlu1 %560 }
 0x145   : > { %v612_v16 = vmul.f32 0.0078125, %v561_v24  ;;  %v2594_v9 = vsub.f32 %v2402_v15, %v611_v18  ;;  %717 = vadd.xlane.f32.xlu1 %v674_v2  ;;  %747 = vadd.xlane.f32.xlu0 %v689_v20  ;;  %v690_v10 = vmul.f32 %v2589_v12, %v2589_v12 }
 0x146   : > { %v591_v48 = vpop.xlane.xlu0 %590 }
 0x147   : > { %v2599_v31 = vsub.f32 %v2411_v22, %v612_v16  ;;  %v627_v32 = vmul.f32 0.0078125, %v591_v48  ;;  %v675_v38 = vmul.f32 %v2594_v9, %v2594_v9 }
 0x148   : > { %v593_v21 = vpop.xlane.xlu1 %592 }
 0x149   : > { %v628_v25 = vmul.f32 0.0078125, %v593_v21  ;;  %v2604_v15 = vsub.f32 %v2413_v23, %v627_v32  ;;  %749 = vadd.xlane.f32.xlu1 %v690_v10  ;;  %719 = vadd.xlane.f32.xlu0 %v675_v38  ;;  %v676_v22 = vmul.f32 %v2599_v31, %v2599_v31 }
 0x14a   : > { %v563_v47 = vpop.xlane.xlu0 %562 }
 0x14b   : > { %v2609_v45 = vsub.f32 %v2421_v29, %v628_v25  ;;  %v613_v53 = vmul.f32 0.0078125, %v563_v47  ;;  %v691_v49 = vmul.f32 %v2604_v15, %v2604_v15 }
 0x14c   : > { %v565_v51 = vpop.xlane.xlu1 %564 }
 0x14d   : > { %v614_v26 = vmul.f32 0.0078125, %v565_v51  ;;  %v2614_v30 = vsub.f32 %v2431_v36, %v613_v53  ;;  %721 = vadd.xlane.f32.xlu1 %v676_v22  ;;  %751 = vadd.xlane.f32.xlu0 %v691_v49  ;;  %v692_v23 = vmul.f32 %v2609_v45, %v2609_v45 }
 0x14e   : > { %v595_v29 = vpop.xlane.xlu0 %594 }
 0x14f   : > { %v2619_v59 = vsub.f32 %v2433_v37, %v614_v26  ;;  %v629_v60 = vmul.f32 0.0078125, %v595_v29  ;;  %v677_v61 = vmul.f32 %v2614_v30, %v2614_v30 }
 0x150   : > { %v597_v63 = vpop.xlane.xlu1 %596 }
 0x151   : > { %v630_v35 = vmul.f32 0.0078125, %v597_v63  ;;  %v2624_v4 = vsub.f32 %v2440_v42, %v629_v60  ;;  %753 = vadd.xlane.f32.xlu1 %v692_v23  ;;  %723 = vadd.xlane.f32.xlu0 %v677_v61  ;;  %v678_v36 = vmul.f32 %v2619_v59, %v2619_v59  ;;  %v2639_v63 = vld [vmem:[%s2913_s2] ss:$0 sm:$0xff] }
 0x153   : > { %v2629_v5 = vsub.f32 %v2447_v46, %v630_v35  ;;  %v693_v37 = vmul.f32 %v2624_v4, %v2624_v4 }
 0x155   : > { %725 = vadd.xlane.f32.xlu1 %v678_v36  ;;  %755 = vadd.xlane.f32.xlu0 %v693_v37  ;;  %v694_v6 = vmul.f32 %v2629_v5, %v2629_v5 }
 0x159   : > { %757 = vadd.xlane.f32.xlu1 %v694_v6 }
 0x1a6   : > { %v696_v11 = vpop.xlane.xlu0 %695 }
 0x1a7   : > { %v759_v42 = vmul.f32 0.0078125, %v696_v11 }
 0x1a9   : > { %v791_v2 = vadd.f32 1e-05, %v759_v42 }
 0x1aa   : > { %v698_v8 = vpop.xlane.xlu1 %697  ;;  %v728_v43 = vpop.xlane.xlu0 %727 }
 0x1ab   : > { %1700 = vrsqrt.f32 %v791_v2  ;;  %v760_v18 = vmul.f32 0.0078125, %v698_v8  ;;  %v775_v20 = vmul.f32 0.0078125, %v728_v43 }
 0x1ad   : > { %v792_v24 = vadd.f32 1e-05, %v760_v18  ;;  %v807_v46 = vadd.f32 1e-05, %v775_v20  ;;  %v2646_v18 = vld [vmem:[%s2914_s3] ss:$0 sm:$0xff] }
 0x1ae   : > { %v730_v16 = vpop.xlane.xlu1 %729  ;;  %v700_v10 = vpop.xlane.xlu0 %699 }
 0x1af   : > { %1702 = vrsqrt.f32 %v792_v24  ;;  %v776_v17 = vmul.f32 0.0078125, %v730_v16  ;;  %v761_v48 = vmul.f32 0.0078125, %v700_v10 }
 0x1b0   : > { %1704 = vrsqrt.f32 %v807_v46 }
 0x1b1   : > { %v808_v32 = vadd.f32 1e-05, %v776_v17  ;;  %v793_v38 = vadd.f32 1e-05, %v761_v48 }
 0x1b2   : > { %v702_v21 = vpop.xlane.xlu1 %701  ;;  %v732_v25 = vpop.xlane.xlu0 %731 }
 0x1b3   : > { %1706 = vrsqrt.f32 %v808_v32  ;;  %v762_v22 = vmul.f32 0.0078125, %v702_v21  ;;  %v777_v47 = vmul.f32 0.0078125, %v732_v25 }
 0x1b4   : > { %1708 = vrsqrt.f32 %v793_v38 }
 0x1b5   : > { %v1701_v53 = vpop.eup %1700  ;;  %v794_v49 = vadd.f32 1e-05, %v762_v22  ;;  %v809_v51 = vadd.f32 1e-05, %v777_v47 }
 0x1b6   : > { %v734_v26 = vpop.xlane.xlu1 %733  ;;  %v704_v23 = vpop.xlane.xlu0 %703  ;;  %v855_v29 = vmul.f32 %v1701_v53, %v2476_v54 }
 0x1b7   : > { %1710 = vrsqrt.f32 %v794_v49  ;;  %v778_v60 = vmul.f32 0.0078125, %v734_v26  ;;  %v763_v61 = vmul.f32 0.0078125, %v704_v23 }
 0x1b8   : > { %1712 = vrsqrt.f32 %v809_v51  ;;  %v894_v8 = vmul.f32 %v2639_v63, %v855_v29 }
 0x1b9   : > { %v1703_v35 = vpop.eup %1702  ;;  %v810_v36 = vadd.f32 1e-05, %v778_v60  ;;  %v795_v37 = vadd.f32 1e-05, %v763_v61 }
 0x1ba   : > { %v1705_v6 = vpop.eup %1704  ;;  %v706_v11 = vpop.xlane.xlu1 %705  ;;  %v856_v2 = vmul.f32 %v1703_v35, %v2484_v0  ;;  %v933_v32 = vadd.f32 %v2646_v18, %v894_v8 }
 0x1bb   : > { %v736_v42 = vpop.xlane.xlu0 %735  ;;  %1714 = vrsqrt.f32 %v810_v36  ;;  %v764_v54 = vmul.f32 0.0078125, %v706_v11  ;;  %v871_v20 = vmul.f32 %v1705_v6, %v2479_v55 }
 0x1bc   : > { %v779_v43 = vmul.f32 0.0078125, %v736_v42  ;;  %1716 = vrsqrt.f32 %v795_v37  ;;  %v895_v24 = vmul.f32 %v2639_v63, %v856_v2 }
 0x1bd   : > { %v1707_v46 = vpop.eup %1706  ;;  %v796_v16 = vadd.f32 1e-05, %v764_v54  ;;  %v910_v25 = vmul.f32 %v2639_v63, %v871_v20 }
 0x1be   : > { %v811_v10 = vadd.f32 1e-05, %v779_v43  ;;  %v1709_v17 = vpop.eup %1708  ;;  %v738_v0 = vpop.xlane.xlu1 %737  ;;  %v934_v38 = vadd.f32 %v2646_v18, %v895_v24  ;;  %v872_v21 = vmul.f32 %v1707_v46, %v2489_v3 }
 0x1bf   : > { %v708_v48 = vpop.xlane.xlu0 %707  ;;  %1718 = vrsqrt.f32 %v796_v16  ;;  %v780_v22 = vmul.f32 0.0078125, %v738_v0  ;;  %v857_v49 = vmul.f32 %v1709_v17, %v2494_v13  ;;  %v949_v3 = vadd.f32 %v2646_v18, %v910_v25 }
 0x1c0   : > { %v765_v55 = vmul.f32 0.0078125, %v708_v48  ;;  %1720 = vrsqrt.f32 %v811_v10  ;;  %v965_v47 = vpack.c.bf16 %v934_v38, %v933_v32  ;;  %v911_v53 = vmul.f32 %v2639_v63, %v872_v21 }
 0x1c1   : > { %v1711_v51 = vpop.eup %1710  ;;  %v812_v26 = vadd.f32 1e-05, %v780_v22  ;;  %v896_v37 = vmul.f32 %v2639_v63, %v857_v49 }
 0x1c2   : > { %v797_v23 = vadd.f32 1e-05, %v765_v55  ;;  %v1713_v29 = vpop.eup %1712  ;;  %v710_v60 = vpop.xlane.xlu1 %709  ;;  %1555 = vmatprep.mubr.bf16.mxu0 %v965_v47  ;;  %v950_v35 = vadd.f32 %v2646_v18, %v911_v53  ;;  %v858_v36 = vmul.f32 %v1711_v51, %v2499_v14 }
 0x1c3   : > { %v740_v61 = vpop.xlane.xlu0 %739  ;;  %1722 = vrsqrt.f32 %v812_v26  ;;  %v766_v6 = vmul.f32 0.0078125, %v710_v60  ;;  %v873_v13 = vmul.f32 %v1713_v29, %v2504_v27  ;;  %v935_v14 = vadd.f32 %v2646_v18, %v896_v37 }
 0x1c4   : > { %v781_v11 = vmul.f32 0.0078125, %v740_v61  ;;  %1724 = vrsqrt.f32 %v797_v23  ;;  %v973_v42 = vpack.c.bf16 %v950_v35, %v949_v3  ;;  %v897_v2 = vmul.f32 %v2639_v63, %v858_v36 }
 0x1c5   : > { %v1715_v8 = vpop.eup %1714  ;;  %v798_v54 = vadd.f32 1e-05, %v766_v6  ;;  %v912_v17 = vmul.f32 %v2639_v63, %v873_v13 }
 0x1c6   : > { %v813_v43 = vadd.f32 1e-05, %v781_v11  ;;  %v1717_v20 = vpop.eup %1716  ;;  %v742_v24 = vpop.xlane.xlu1 %741  ;;  %1571 = vmatprep.mubr.bf16.mxu1 %v973_v42  ;;  %v936_v16 = vadd.f32 %v2646_v18, %v897_v2  ;;  %v874_v10 = vmul.f32 %v1715_v8, %v2509_v28 }
 0x1c7   : > { %v712_v46 = vpop.xlane.xlu0 %711  ;;  %1726 = vrsqrt.f32 %v798_v54  ;;  %v782_v27 = vmul.f32 0.0078125, %v742_v24  ;;  %v859_v38 = vmul.f32 %v1717_v20, %v2514_v40  ;;  %v951_v28 = vadd.f32 %v2646_v18, %v912_v17 }
 0x1c8   : > { %v767_v0 = vmul.f32 0.0078125, %v712_v46  ;;  %1728 = vrsqrt.f32 %v813_v43  ;;  %v966_v48 = vpack.c.bf16 %v936_v16, %v935_v14  ;;  %v913_v32 = vmul.f32 %v2639_v63, %v874_v10 }
 0x1c9   : > { %v1719_v21 = vpop.eup %1718  ;;  %v814_v25 = vadd.f32 1e-05, %v782_v27  ;;  %v898_v26 = vmul.f32 %v2639_v63, %v859_v38 }
 0x1ca   : > { %v799_v22 = vadd.f32 1e-05, %v767_v0  ;;  %v1721_v55 = vpop.eup %1720  ;;  %v714_v47 = vpop.xlane.xlu1 %713  ;;  %1556 = vmatmul.mubr.bf16.vlgmr.msra.gmra.mrb[0].mxu0 %v966_v48  ;;  %v952_v49 = vadd.f32 %v2646_v18, %v913_v32  ;;  %v860_v51 = vmul.f32 %v1719_v21, %v2519_v41 }
 0x1cb   : > { %v744_v53 = vpop.xlane.xlu0 %743  ;;  %1730 = vrsqrt.f32 %v814_v25  ;;  %v768_v23 = vmul.f32 0.0078125, %v714_v47  ;;  %v875_v40 = vmul.f32 %v1721_v55, %v2524_v56  ;;  %v937_v41 = vadd.f32 %v2646_v18, %v898_v26 }
 0x1cc   : > { %v783_v29 = vmul.f32 0.0078125, %v744_v53  ;;  %1732 = vrsqrt.f32 %v799_v22  ;;  %v974_v60 = vpack.c.bf16 %v952_v49, %v951_v28  ;;  %v899_v61 = vmul.f32 %v2639_v63, %v860_v51 }
 0x1cd   : > { %v1723_v3 = vpop.eup %1722  ;;  %v800_v35 = vadd.f32 1e-05, %v768_v23  ;;  %v914_v2 = vmul.f32 %v2639_v63, %v875_v40 }
 0x1ce   : > { %v815_v36 = vadd.f32 1e-05, %v783_v29  ;;  %v1725_v37 = vpop.eup %1724  ;;  %v746_v6 = vpop.xlane.xlu1 %745  ;;  %1572 = vmatmul.mubr.bf16.vlgmr.msra.gmra.mrb[0].mxu1 %v974_v60  ;;  %v938_v13 = vadd.f32 %v2646_v18, %v899_v61  ;;  %v876_v42 = vmul.f32 %v1723_v3, %v2529_v58 }
 0x1cf   : > { %v716_v11 = vpop.xlane.xlu0 %715  ;;  %1734 = vrsqrt.f32 %v800_v35  ;;  %v784_v56 = vmul.f32 0.0078125, %v746_v6  ;;  %v861_v20 = vmul.f32 %v1725_v37, %v2534_v1  ;;  %v953_v58 = vadd.f32 %v2646_v18, %v914_v2 }
 0x1d0   : > { %v769_v8 = vmul.f32 0.0078125, %v716_v11  ;;  %1736 = vrsqrt.f32 %v815_v36  ;;  %v967_v54 = vpack.c.bf16 %v938_v13, %v937_v41  ;;  %v915_v43 = vmul.f32 %v2639_v63, %v876_v42 }
 0x1d1   : > { %v1727_v24 = vpop.eup %1726  ;;  %v816_v46 = vadd.f32 1e-05, %v784_v56  ;;  %v900_v48 = vmul.f32 %v2639_v63, %v861_v20 }
 0x1d2   : > { %v801_v14 = vadd.f32 1e-05, %v769_v8  ;;  %v1729_v16 = vpop.eup %1728  ;;  %v718_v10 = vpop.xlane.xlu1 %717  ;;  %1559 = vmatprep.mubr.bf16.mxu0 %v967_v54  ;;  %v954_v27 = vadd.f32 %v2646_v18, %v915_v43  ;;  %v862_v0 = vmul.f32 %v1727_v24, %v2539_v7 }
 0x1d3   : > { %v748_v17 = vpop.xlane.xlu0 %747  ;;  %1738 = vrsqrt.f32 %v816_v46  ;;  %v770_v32 = vmul.f32 0.0078125, %v718_v10  ;;  %v877_v1 = vmul.f32 %v1729_v16, %v2544_v39  ;;  %v939_v7 = vadd.f32 %v2646_v18, %v900_v48 }
 0x1d4   : > { %v785_v38 = vmul.f32 0.0078125, %v748_v17  ;;  %1740 = vrsqrt.f32 %v801_v14  ;;  %v975_v21 = vpack.c.bf16 %v954_v27, %v953_v58  ;;  %v901_v25 = vmul.f32 %v2639_v63, %v862_v0 }
 0x1d5   : > { %v1731_v22 = vpop.eup %1730  ;;  %v802_v55 = vadd.f32 1e-05, %v770_v32  ;;  %v916_v23 = vmul.f32 %v2639_v63, %v877_v1 }
 0x1d6   : > { %v817_v47 = vadd.f32 1e-05, %v785_v38  ;;  %v1733_v53 = vpop.eup %1732  ;;  %v750_v28 = vpop.xlane.xlu1 %749  ;;  %1575 = vmatprep.mubr.bf16.mxu1 %v975_v21  ;;  %v940_v51 = vadd.f32 %v2646_v18, %v901_v25  ;;  %v878_v26 = vmul.f32 %v1731_v22, %v2549_v19 }
 0x1d7   : > { %v720_v49 = vpop.xlane.xlu0 %719  ;;  %1742 = vrsqrt.f32 %v802_v55  ;;  %v786_v39 = vmul.f32 0.0078125, %v750_v28  ;;  %v863_v61 = vmul.f32 %v1733_v53, %v2554_v44  ;;  %v955_v19 = vadd.f32 %v2646_v18, %v916_v23 }
 0x1d8   : > { %v771_v29 = vmul.f32 0.0078125, %v720_v49  ;;  %1744 = vrsqrt.f32 %v817_v47  ;;  %v968_v40 = vpack.c.bf16 %v940_v51, %v939_v7  ;;  %v917_v60 = vmul.f32 %v2639_v63, %v878_v26 }
 0x1d9   : > { %v1735_v3 = vpop.eup %1734  ;;  %v818_v35 = vadd.f32 1e-05, %v786_v39  ;;  %v902_v42 = vmul.f32 %v2639_v63, %v863_v61 }
 0x1da   : > { %v803_v36 = vadd.f32 1e-05, %v771_v29  ;;  %v1737_v37 = vpop.eup %1736  ;;  %v722_v6 = vpop.xlane.xlu1 %721  ;;  %1560 = vmatmul.mubr.bf16.gmra.mrb[4].mxu0 %v968_v40  ;;  %v956_v41 = vadd.f32 %v2646_v18, %v917_v60  ;;  %v864_v13 = vmul.f32 %v1735_v3, %v2559_v33 }
 0x1db   : > { %v752_v11 = vpop.xlane.xlu0 %751  ;;  %1746 = vrsqrt.f32 %v818_v35  ;;  %v772_v2 = vmul.f32 0.0078125, %v722_v6  ;;  %v879_v44 = vmul.f32 %v1737_v37, %v2564_v52  ;;  %v941_v33 = vadd.f32 %v2646_v18, %v902_v42 }
 0x1dc   : > { %v787_v56 = vmul.f32 0.0078125, %v752_v11  ;;  %1748 = vrsqrt.f32 %v803_v36  ;;  %v976_v8 = vpack.c.bf16 %v956_v41, %v955_v19  ;;  %v903_v54 = vmul.f32 %v2639_v63, %v864_v13 }
 0x1dd   : > { %v1739_v43 = vpop.eup %1738  ;;  %v804_v20 = vadd.f32 1e-05, %v772_v2  ;;  %v918_v58 = vmul.f32 %v2639_v63, %v879_v44 }
 0x1de   : > { %v819_v24 = vadd.f32 1e-05, %v787_v56  ;;  %v1741_v46 = vpop.eup %1740  ;;  %v754_v14 = vpop.xlane.xlu1 %753  ;;  %1576 = vmatmul.mubr.bf16.gmra.mrb[4].mxu1 %v976_v8  ;;  %v942_v10 = vadd.f32 %v2646_v18, %v903_v54  ;;  %v880_v17 = vmul.f32 %v1739_v43, %v2569_v50 }
 0x1df   : > { %v724_v16 = vpop.xlane.xlu0 %723  ;;  %1750 = vrsqrt.f32 %v804_v20  ;;  %v788_v52 = vmul.f32 0.0078125, %v754_v14  ;;  %v865_v32 = vmul.f32 %v1741_v46, %v2574_v57  ;;  %v957_v50 = vadd.f32 %v2646_v18, %v918_v58 }
 0x1e0   : > { %v773_v27 = vmul.f32 0.0078125, %v724_v16  ;;  %1752 = vrsqrt.f32 %v819_v24  ;;  %v969_v0 = vpack.c.bf16 %v942_v10, %v941_v33  ;;  %v919_v48 = vmul.f32 %v2639_v63, %v880_v17 }
 0x1e1   : > { %v1743_v38 = vpop.eup %1742  ;;  %v820_v1 = vadd.f32 1e-05, %v788_v52  ;;  %v904_v28 = vmul.f32 %v2639_v63, %v865_v32 }
 0x1e2   : > { %v805_v21 = vadd.f32 1e-05, %v773_v27  ;;  %v1745_v25 = vpop.eup %1744  ;;  %v726_v22 = vpop.xlane.xlu1 %725  ;;  %1563 = vmatprep.mubr.bf16.mxu0 %v969_v0  ;;  %v958_v47 = vadd.f32 %v2646_v18, %v919_v48  ;;  %v866_v53 = vmul.f32 %v1743_v38, %v2579_v34 }
 0x1e3   : > { %v756_v55 = vpop.xlane.xlu0 %755  ;;  %1754 = vrsqrt.f32 %v820_v1  ;;  %v774_v49 = vmul.f32 0.0078125, %v726_v22  ;;  %v881_v57 = vmul.f32 %v1745_v25, %v2584_v62  ;;  %v943_v61 = vadd.f32 %v2646_v18, %v904_v28 }
 0x1e4   : > { %v789_v7 = vmul.f32 0.0078125, %v756_v55  ;;  %1756 = vrsqrt.f32 %v805_v21  ;;  %v977_v51 = vpack.c.bf16 %v958_v47, %v957_v50  ;;  %v905_v26 = vmul.f32 %v2639_v63, %v866_v53 }
 0x1e5   : > { %v1747_v23 = vpop.eup %1746  ;;  %v806_v39 = vadd.f32 1e-05, %v774_v49  ;;  %v920_v35 = vmul.f32 %v2639_v63, %v881_v57 }
 0x1e6   : > { %v821_v29 = vadd.f32 1e-05, %v789_v7  ;;  %v1749_v40 = vpop.eup %1748  ;;  %v758_v60 = vpop.xlane.xlu1 %757  ;;  %1579 = vmatprep.mubr.bf16.mxu1 %v977_v51  ;;  %v944_v34 = vadd.f32 %v2646_v18, %v905_v26  ;;  %v882_v3 = vmul.f32 %v1747_v23, %v2589_v12 }
 0x1e7   : > { %1758 = vrsqrt.f32 %v806_v39  ;;  %v790_v62 = vmul.f32 0.0078125, %v758_v60  ;;  %v867_v36 = vmul.f32 %v1749_v40, %v2594_v9  ;;  %v959_v13 = vadd.f32 %v2646_v18, %v920_v35 }
 0x1e8   : > { %1760 = vrsqrt.f32 %v821_v29  ;;  %v970_v37 = vpack.c.bf16 %v944_v34, %v943_v61  ;;  %v921_v6 = vmul.f32 %v2639_v63, %v882_v3 }
 0x1e9   : > { %v1751_v11 = vpop.eup %1750  ;;  %v822_v19 = vadd.f32 1e-05, %v790_v62  ;;  %v906_v2 = vmul.f32 %v2639_v63, %v867_v36 }
 0x1ea   : > { %v1753_v41 = vpop.eup %1752  ;;  %1564 = vmatmul.mubr.bf16.gmra.mrb[8].mxu0 %v970_v37  ;;  %v960_v42 = vadd.f32 %v2646_v18, %v921_v6  ;;  %v868_v12 = vmul.f32 %v1751_v11, %v2599_v31 }
 0x1eb   : > { %1762 = vrsqrt.f32 %v822_v19  ;;  %v883_v56 = vmul.f32 %v1753_v41, %v2604_v15  ;;  %v945_v43 = vadd.f32 %v2646_v18, %v906_v2 }
 0x1ec   : > { %v978_v9 = vpack.c.bf16 %v960_v42, %v959_v13  ;;  %v907_v44 = vmul.f32 %v2639_v63, %v868_v12 }
 0x1ed   : > { %v1755_v8 = vpop.eup %1754  ;;  %v922_v46 = vmul.f32 %v2639_v63, %v883_v56 }
 0x1ee   : > { %v1757_v54 = vpop.eup %1756  ;;  %1580 = vmatmul.mubr.bf16.gmra.mrb[8].mxu1 %v978_v9  ;;  %v946_v20 = vadd.f32 %v2646_v18, %v907_v44  ;;  %v884_v24 = vmul.f32 %v1755_v8, %v2609_v45 }
 0x1ef   : > { %v869_v31 = vmul.f32 %v1757_v54, %v2614_v30  ;;  %v961_v10 = vadd.f32 %v2646_v18, %v922_v46 }
 0x1f0   : > { %v971_v14 = vpack.c.bf16 %v946_v20, %v945_v43  ;;  %v923_v16 = vmul.f32 %v2639_v63, %v884_v24 }
 0x1f1   : > { %v1759_v15 = vpop.eup %1758  ;;  %v908_v52 = vmul.f32 %v2639_v63, %v869_v31 }
 0x1f2   : > { %v1761_v33 = vpop.eup %1760  ;;  %1567 = vmatprep.mubr.bf16.mxu0 %v971_v14  ;;  %v962_v17 = vadd.f32 %v2646_v18, %v923_v16  ;;  %v870_v58 = vmul.f32 %v1759_v15, %v2619_v59 }
 0x1f3   : > { %v885_v45 = vmul.f32 %v1761_v33, %v2624_v4  ;;  %v947_v48 = vadd.f32 %v2646_v18, %v908_v52 }
 0x1f4   : > { %v979_v27 = vpack.c.bf16 %v962_v17, %v961_v10  ;;  %v909_v30 = vmul.f32 %v2639_v63, %v870_v58 }
 0x1f5   : > { %v1763_v0 = vpop.eup %1762  ;;  %v924_v59 = vmul.f32 %v2639_v63, %v885_v45 }
 0x1f6   : > { %1583 = vmatprep.mubr.bf16.mxu1 %v979_v27  ;;  %v948_v32 = vadd.f32 %v2646_v18, %v909_v30  ;;  %v886_v38 = vmul.f32 %v1763_v0, %v2629_v5 }
 0x1f7   : > { %v963_v21 = vadd.f32 %v2646_v18, %v924_v59 }
 0x1f8   : > { %v972_v1 = vpack.c.bf16 %v948_v32, %v947_v48  ;;  %v925_v4 = vmul.f32 %v2639_v63, %v886_v38 }
 0x1fa   : > { %1568 = vmatmul.mubr.bf16.gmra.mrb[12].mxu0 %v972_v1  ;;  %v964_v25 = vadd.f32 %v2646_v18, %v925_v4 }
 0x1fc   : > { %v980_v22 = vpack.c.bf16 %v964_v25, %v963_v21 }
 0x1fe   : > { %1584 = vmatmul.mubr.bf16.gmra.mrb[12].mxu1 %v980_v22 }
 0x1ff   : > { %1865 = shalt.err (!%p1862_p8)
}
 0x200   : > { %s1866_s26 = scalar_lea.hbm %s2747_s21, 4096  ;;  %s1870_s9 = scalar_lea.hbm %s2918_s7, 8192 }
 0x201   : > { %p1867_p12 = scmp.ne.s32.totalorder %s2747_s21, %s1866_s26  ;;  %p1871_p6 = scmp.lt.u32.totalorder %s2747_s21, %s2918_s7 }
 0x202   : > { %p1872_p13 = scmp.lt.u32.totalorder %s1870_s9, %s1866_s26  ;;  %p1874_p5 = scmp.lt.u32.totalorder %s1866_s26, %s2747_s21 }
 0x203   : > { %p1868_p11 = pnand %p1867_p12, %p2119_p10 }
 0x204   : > { %p1873_p0 = por %p1872_p13, %p1871_p6 }
 0x205   : > { %p1869_p3 = pneg %p1868_p11 }
 0x206   : > { %p1875_p9 = por %p1874_p5, %p1873_p0 }
 0x208   : > { %p1876_p1 = pnand %p1875_p9, %p1869_p3 }
 0x20a   : > { %1879 = shalt.err (!%p1876_p1)
}
 0x20b   : > { %s1984_s17 = smov 128   ;;  %s1985_s19 = smov 8   ;;  %v2782_v5 = vld [vmem:[%s2916_s5] ss:$0 sm:$0xff] }
 0x20c   : > { %1612 = dma.vmem_to_hbm [thread:$0]  (%p2119_p10), %s2750_s22, 4096, %s2747_s21, %s1283_s12, %s1984_s17, %s1984_s17, %s1985_s19  }
 0x20d   : > { %s2787_s20 = scalar_lea.vmem [#allocation9], %s2226_s4  ;;  %s2855_s12 = scalar_lea.hbm %s2917_s6, %s1513_s18 }
 0x20e   : > { %s1297_s4 = sshll.u32 %s2787_s20, 4  ;;  %s1278_s16 = scalar_lea.sflag [#allocation5], %s2223_s10  ;;  %s2857_s4 = int_to_ptr.vmem [resolvable:$true] %s1297_s4 }
 0x20f   : > { %s1880_s0 = scalar_lea.vmem %s2857_s4, 4096  ;;  %s1986_s26 = smov [#allocation9]  }
 0x210   : > { %p1881_p2 = scmp.ne.s32.totalorder %s2857_s4, %s1880_s0  ;;  %s1884_s27 = sshll.u32 %s1986_s26, 4  ;;  %s1885_s27 = int_to_ptr.vmem [resolvable:$false] %s1884_s27 }
 0x211   : > { %s1886_s11 = scalar_lea.vmem %s1885_s27, 8192  ;;  %p1887_p8 = scmp.lt.s32.totalorder %s2857_s4, %s1885_s27 }
 0x212   : > { %p1882_p7 = pnand %p1881_p2, %p2119_p10  ;;  %p1888_p12 = scmp.lt.s32.totalorder %s1886_s11, %s1880_s0 }
 0x214   : > { %p1883_p4 = pneg %p1882_p7  ;;  %p1889_p11 = por %p1888_p12, %p1887_p8 }
 0x216   : > { %p1890_p3 = pnand %p1889_p11, %p1883_p4 }
 0x29d   : > { %v1557_v63 = vpop.f32.mrb[0].mxu0 }
 0x29e   : > { %v1127_v18 = vadd.f32 %v1557_v63, %v2782_v5  ;;  %v1118_v55 = vpop.f32.mrb[1].mxu0 }
 0x29f   : > { %v1119_v50 = vadd.f32 %v2782_v5, %v1118_v55  ;;  %v1558_v47 = vpop.f32.mrb[2].mxu0 }
 0x2a0   : > { %1247 = vst [vmem:[%s2787_s20 + $0x10] sm:$0xff] %v1127_v18  ;;  %v1130_v53 = vadd.f32 %v1558_v47, %v2782_v5  ;;  %v1121_v28 = vpop.f32.mrb[3].mxu0 }
 0x2a1   : > { %1245 = vst [vmem:[%s2787_s20] sm:$0xff] %v1119_v50  ;;  %v1122_v49 = vadd.f32 %v2782_v5, %v1121_v28  ;;  %v1573_v7 = vpop.f32.mrb[0].mxu1 }
 0x2a2   : > { %1248 = vst [vmem:[%s2787_s20 + $0x18] sm:$0xff] %v1130_v53  ;;  %v1191_v57 = vadd.f32 %v1573_v7, %v2782_v5  ;;  %v1182_v51 = vpop.f32.mrb[1].mxu1 }
 0x2a3   : > { %1246 = vst [vmem:[%s2787_s20 + $0x8] sm:$0xff] %v1122_v49  ;;  %v1183_v26 = vadd.f32 %v2782_v5, %v1182_v51  ;;  %v1574_v23 = vpop.f32.mrb[2].mxu1 }
 0x2a4   : > { %1263 = vst [vmem:[%s2787_s20 + $0x90] sm:$0xff] %v1191_v57  ;;  %v1194_v39 = vadd.f32 %v1574_v23, %v2782_v5  ;;  %v1185_v29 = vpop.f32.mrb[3].mxu1 }
 0x2a5   : > { %1261 = vst [vmem:[%s2787_s20 + $0x80] sm:$0xff] %v1183_v26  ;;  %v1186_v40 = vadd.f32 %v2782_v5, %v1185_v29 }
 0x2a6   : > { %1264 = vst [vmem:[%s2787_s20 + $0x98] sm:$0xff] %v1194_v39 }
 0x2a7   : > { %1262 = vst [vmem:[%s2787_s20 + $0x88] sm:$0xff] %v1186_v40 }
 0x2ad   : > { %v1561_v60 = vpop.f32.mrb[4].mxu0 }
 0x2ae   : > { %v1143_v61 = vadd.f32 %v1561_v60, %v2782_v5  ;;  %v1134_v34 = vpop.f32.mrb[5].mxu0 }
 0x2af   : > { %v1135_v3 = vadd.f32 %v2782_v5, %v1134_v34  ;;  %v1562_v35 = vpop.f32.mrb[6].mxu0 }
 0x2b0   : > { %1251 = vst [vmem:[%s2787_s20 + $0x30] sm:$0xff] %v1143_v61  ;;  %v1146_v62 = vadd.f32 %v1562_v35, %v2782_v5  ;;  %v1137_v36 = vpop.f32.mrb[7].mxu0 }
 0x2b1   : > { %1249 = vst [vmem:[%s2787_s20 + $0x20] sm:$0xff] %v1135_v3  ;;  %v1138_v37 = vadd.f32 %v2782_v5, %v1137_v36  ;;  %v1577_v6 = vpop.f32.mrb[4].mxu1 }
 0x2b2   : > { %1252 = vst [vmem:[%s2787_s20 + $0x38] sm:$0xff] %v1146_v62  ;;  %v1207_v11 = vadd.f32 %v1577_v6, %v2782_v5  ;;  %v1198_v19 = vpop.f32.mrb[5].mxu1 }
 0x2b3   : > { %1250 = vst [vmem:[%s2787_s20 + $0x28] sm:$0xff] %v1138_v37  ;;  %v1199_v41 = vadd.f32 %v2782_v5, %v1198_v19  ;;  %v1578_v13 = vpop.f32.mrb[6].mxu1 }
 0x2b4   : > { %1267 = vst [vmem:[%s2787_s20 + $0xb0] sm:$0xff] %v1207_v11  ;;  %v1210_v42 = vadd.f32 %v1578_v13, %v2782_v5  ;;  %v1201_v12 = vpop.f32.mrb[7].mxu1 }
 0x2b5   : > { %1265 = vst [vmem:[%s2787_s20 + $0xa0] sm:$0xff] %v1199_v41  ;;  %v1202_v2 = vadd.f32 %v2782_v5, %v1201_v12 }
 0x2b6   : > { %1268 = vst [vmem:[%s2787_s20 + $0xb8] sm:$0xff] %v1210_v42 }
 0x2b7   : > { %1266 = vst [vmem:[%s2787_s20 + $0xa8] sm:$0xff] %v1202_v2 }
 0x2bd   : > { %v1565_v56 = vpop.f32.mrb[8].mxu0 }
 0x2be   : > { %v1159_v9 = vadd.f32 %v1565_v56, %v2782_v5  ;;  %v1150_v44 = vpop.f32.mrb[9].mxu0 }
 0x2bf   : > { %v1151_v8 = vadd.f32 %v2782_v5, %v1150_v44  ;;  %v1566_v54 = vpop.f32.mrb[10].mxu0 }
 0x2c0   : > { %1255 = vst [vmem:[%s2787_s20 + $0x50] sm:$0xff] %v1159_v9  ;;  %v1162_v43 = vadd.f32 %v1566_v54, %v2782_v5  ;;  %v1153_v20 = vpop.f32.mrb[11].mxu0 }
 0x2c1   : > { %1253 = vst [vmem:[%s2787_s20 + $0x40] sm:$0xff] %v1151_v8  ;;  %v1154_v24 = vadd.f32 %v2782_v5, %v1153_v20  ;;  %v1581_v46 = vpop.f32.mrb[8].mxu1 }
 0x2c2   : > { %1256 = vst [vmem:[%s2787_s20 + $0x58] sm:$0xff] %v1162_v43  ;;  %v1223_v31 = vadd.f32 %v1581_v46, %v2782_v5  ;;  %v1214_v14 = vpop.f32.mrb[9].mxu1 }
 0x2c3   : > { %1254 = vst [vmem:[%s2787_s20 + $0x48] sm:$0xff] %v1154_v24  ;;  %v1215_v16 = vadd.f32 %v2782_v5, %v1214_v14  ;;  %v1582_v15 = vpop.f32.mrb[10].mxu1 }
 0x2c4   : > { %1271 = vst [vmem:[%s2787_s20 + $0xd0] sm:$0xff] %v1223_v31  ;;  %v1226_v33 = vadd.f32 %v1582_v15, %v2782_v5  ;;  %v1217_v10 = vpop.f32.mrb[11].mxu1 }
 0x2c5   : > { %1269 = vst [vmem:[%s2787_s20 + $0xc0] sm:$0xff] %v1215_v16  ;;  %v1218_v17 = vadd.f32 %v2782_v5, %v1217_v10 }
 0x2c6   : > { %1272 = vst [vmem:[%s2787_s20 + $0xd8] sm:$0xff] %v1226_v33 }
 0x2c7   : > { %1270 = vst [vmem:[%s2787_s20 + $0xc8] sm:$0xff] %v1218_v17 }
 0x2cd   : > { %v1569_v58 = vpop.f32.mrb[12].mxu0 }
 0x2ce   : > { %v1175_v52 = vadd.f32 %v1569_v58, %v2782_v5  ;;  %v1166_v45 = vpop.f32.mrb[13].mxu0 }
 0x2cf   : > { %v1167_v27 = vadd.f32 %v2782_v5, %v1166_v45  ;;  %v1570_v30 = vpop.f32.mrb[14].mxu0 }
 0x2d0   : > { %1259 = vst [vmem:[%s2787_s20 + $0x70] sm:$0xff] %v1175_v52  ;;  %v1178_v0 = vadd.f32 %v1570_v30, %v2782_v5  ;;  %v1169_v48 = vpop.f32.mrb[15].mxu0 }
 0x2d1   : > { %1257 = vst [vmem:[%s2787_s20 + $0x60] sm:$0xff] %v1167_v27  ;;  %v1170_v32 = vadd.f32 %v2782_v5, %v1169_v48  ;;  %v1585_v38 = vpop.f32.mrb[12].mxu1 }
 0x2d2   : > { %1260 = vst [vmem:[%s2787_s20 + $0x78] sm:$0xff] %v1178_v0  ;;  %v1239_v59 = vadd.f32 %v1585_v38, %v2782_v5  ;;  %v1230_v1 = vpop.f32.mrb[13].mxu1 }
 0x2d3   : > { %1258 = vst [vmem:[%s2787_s20 + $0x68] sm:$0xff] %v1170_v32  ;;  %v1231_v4 = vadd.f32 %v2782_v5, %v1230_v1  ;;  %v1586_v21 = vpop.f32.mrb[14].mxu1 }
 0x2d4   : > { %1275 = vst [vmem:[%s2787_s20 + $0xf0] sm:$0xff] %v1239_v59  ;;  %v1242_v25 = vadd.f32 %v1586_v21, %v2782_v5  ;;  %v1233_v22 = vpop.f32.mrb[15].mxu1 }
 0x2d5   : > { %1273 = vst [vmem:[%s2787_s20 + $0xe0] sm:$0xff] %v1231_v4  ;;  %v1234_v63 = vadd.f32 %v2782_v5, %v1233_v22 }
 0x2d6   : > { %1276 = vst [vmem:[%s2787_s20 + $0xf8] sm:$0xff] %v1242_v25 }
 0x2d7   : > { %1274 = vst [vmem:[%s2787_s20 + $0xe8] sm:$0xff] %v1234_v63 }
 0x2d8   : > { %1893 = shalt.err (!%p1890_p3)
}
 0x2d9   : > { %s1894_s18 = scalar_lea.hbm %s2855_s12, 4096  ;;  %s1898_s23 = scalar_lea.hbm %s2917_s6, 8192 }
 0x2da   : > { %p1895_p6 = scmp.ne.s32.totalorder %s2855_s12, %s1894_s18  ;;  %p1899_p5 = scmp.lt.u32.totalorder %s2855_s12, %s2917_s6 }
 0x2db   : > { %p1900_p9 = scmp.lt.u32.totalorder %s1898_s23, %s1894_s18  ;;  %p1902_p2 = scmp.lt.u32.totalorder %s1894_s18, %s2855_s12 }
 0x2dc   : > { %p1896_p13 = pnand %p1895_p6, %p2119_p10 }
 0x2dd   : > { %p1901_p1 = por %p1900_p9, %p1899_p5 }
 0x2de   : > { %p1897_p0 = pneg %p1896_p13 }
 0x2df   : > { %p1903_p7 = por %p1902_p2, %p1901_p1 }
 0x2e1   : > { %p1904_p4 = pnand %p1903_p7, %p1897_p0 }
 0x2e3   : > { %1907 = shalt.err (!%p1904_p4)
}
 0x2e4   : > { %1611 = dma.vmem_to_hbm [thread:$0]  (%p2119_p10), %s2857_s4, 4096, %s2855_s12, %s1278_s16, %s1984_s17, %s1984_s17, %s1985_s19  }
 0x2e5 PF: > { %s2947_s15 = sld [smem:[#allocation18_spill]]  ;;  %s1328_s20 = sand.u32 1, %s1954_s24  }
 0x2e6   : > { %p2949_p12 = scmp.ge.s32.totalorder %s1974_s29, 2  ;;  %s1329_s21 = scalar_lea.sflag [#allocation5], %s1328_s20 }
 0x2eb   : > { %p2948_p8 = scmp.ne.s32.totalorder %s2947_s15, 0 }
 0x2ed   : > { %p1627_p11 = pnand %p2949_p12, %p2948_p8 }
 0x2ef   : > { %1945 = dma.done.wait (!%p1627_p11), %s1329_s21, 4096  }
 0x2f0   : > { %1947 = vsyncadd (!%p1627_p11), %s1329_s21, 4294963200  ;;  %s1338_s14 = scalar_lea.sflag [#allocation11], %s1328_s20 }
 0x2f1   : > { %1949 = dma.done.wait (!%p1627_p11), %s1338_s14, 4096  }
 0x2f2   : > { %1951 = vsyncadd (!%p1627_p11), %s1338_s14, 4294963200  ;;  %s30_s29 = sadd.s32 1, %s1974_s29   ;;  %s2950_s10 = sld [smem:[#allocation17_spill]] }
 0x2f3   : > { %p27_p3 = scmp.ge.s32.totalorder %s30_s29, 4   ;;  %s2951_s26 = sld [smem:[#allocation20_spill]] }
 0x2f4   : > { %s2952_s17 = sld [smem:[#allocation19_spill]]  ;;  %s2953_s24 = smov %s1958_s25 }
 0x2f5   : > { %s2955_s27 = smov %s1970_s28  ;;  %29 = sbr.rel (!%p27_p3) target bundleno = 13 (0xd), region = 131 }
 0x2f8   : > { %s2954_s25 = smov %s2950_s10 }
 0x2fa   : > { %s2956_s28 = smov %s2952_s17 }
 0x2fc   :  { %1343 = vsyncpa [#allocation4], 1 }
 0x2fd   :  { %1345 = vsyncpa [#allocation4 + $0x1], 1 }
 0x2fe   :  { %1346 = vsyncpa [#allocation7], 1 }
 0x2ff   :  { %1348 = vsyncpa [#allocation7 + $0x1], 1 }
 0x300   :  { %1349 = vsyncpa [#allocation5], 1 }
 0x301   :  { %1351 = vsyncpa [#allocation5 + $0x1], 1 }
 0x302   :  { %1352 = vsyncpa [#allocation11], 1 }
 0x303   :  { %1354 = vsyncpa [#allocation11 + $0x1], 1 }

</bundles_post_ra>
